<compile_context>
chip_gen: v5e
topology: v5e:2x2
jax: 0.10.0
libtpu: 0.0.40
codegen_flags: <defaults>
</compile_context>

<pallas_src>
import functools

import jax
import jax.numpy as jnp
from jax import lax
from jax.experimental import pallas as pl
from jax.experimental.pallas import tpu as pltpu


def _basic_conv_kernel(x_ref, w_ref, scale_ref, shift_ref, o_ref,
                       xpad_ref, pcol_ref, *,
                       KH, KW, H, W, H_out, W_out, Cin,
                       stride, padding, dilation, relu):
    # x_ref:     (1, H, W, Cin)        un-padded NHWC tile (compute dtype, e.g. bf16)
    # w_ref:     (KH*KW*Cin, TC)       im2col-ordered weights (compute dtype), TC = 128-tile of Cout_p
    # scale_ref: (1, TC)  f32          fused BN scale  = gamma / sqrt(var + eps)
    # shift_ref: (1, TC)  f32          fused BN shift  = beta - mean * scale (+ bias*scale)
    # o_ref:     (1, H_out*W_out, TC)  f32, lane-dense output tile
    # xpad_ref:  (Hp, Wp, Cin) f32     VMEM scratch: zero-padded activation (no HBM pad)
    # pcol_ref:  (H_out*W_out, KH*KW*Cin) f32 VMEM scratch: im2col patch matrix
    M = H_out * W_out

    # ---- in-VMEM zero padding (replaces the wrapper's jnp.pad in HBM) ----
    if padding > 0:
        xpad_ref[...] = jnp.zeros_like(xpad_ref)
    xpad_ref[pl.ds(padding, H), pl.ds(padding, W), :] = x_ref[0].astype(xpad_ref.dtype)

    # ---- im2col: fold all KH*KW taps into one contraction axis ----
    for kh in range(KH):
        for kw in range(KW):
            t = kh * KW + kw
            win = xpad_ref[pl.ds(kh * dilation, H_out, stride),
                           pl.ds(kw * dilation, W_out, stride), :]      # (H_out, W_out, Cin)
            pcol_ref[:, pl.ds(t * Cin, Cin)] = win.reshape(M, Cin)

    # ---- single MXU matmul: (M, KH*KW*Cin) x (KH*KW*Cin, TC) -> f32 accumulate ----
    patches = pcol_ref[...].astype(w_ref.dtype)
    acc = jnp.dot(patches, w_ref[...], preferred_element_type=jnp.float32)  # (M, TC)

    # ---- fused inference BatchNorm + optional ReLU (f32 epilogue) ----
    y = acc * scale_ref[0] + shift_ref[0]
    if relu:
        y = jnp.maximum(y, 0.0)
    o_ref[0] = y.astype(o_ref.dtype)


def basic_conv_forward(x_nchw, weight_oihw, bn_gamma, bn_beta, bn_mean, bn_var,
                       *, stride=1, padding=0, dilation=1, eps=1e-5,
                       relu=True, bn=True, conv_bias=None,
                       compute_dtype=jnp.bfloat16, cout_tile=128):
    """Pallas implementation of BasicConv.forward. Input/output are NCHW (like PyTorch)."""
    N, Cin, H, W = x_nchw.shape
    Cout, Cin_w, KH, KW = weight_oihw.shape
    assert Cin_w == Cin, "groups != 1 not supported"  # TODO(synk): grouped conv

    H_out = (H + 2 * padding - dilation * (KH - 1) - 1) // stride + 1
    W_out = (W + 2 * padding - dilation * (KW - 1) - 1) // stride + 1
    Hp, Wp = H + 2 * padding, W + 2 * padding
    K = KH * KW * Cin
    M = H_out * W_out

    # ---- lane-dense Cout: pad to a multiple of 128 and tile it on a grid axis ----
    Cout_p = ((Cout + cout_tile - 1) // cout_tile) * cout_tile
    n_cout_tiles = Cout_p // cout_tile

    # Weights: OIHW -> (KH*KW*Cin, Cout_p), K ordered as (kh, kw, cin) to match the kernel.
    w_mat = jnp.transpose(weight_oihw, (2, 3, 1, 0)).reshape(K, Cout)
    w_mat = jnp.pad(w_mat, ((0, 0), (0, Cout_p - Cout))).astype(compute_dtype)

    # Fused inference BatchNorm (running stats) -> per-channel scale/shift, kept in f32.
    if bn:
        scale = bn_gamma.astype(jnp.float32) / jnp.sqrt(bn_var.astype(jnp.float32) + eps)
        bias = jnp.zeros((Cout,), jnp.float32) if conv_bias is None else conv_bias.astype(jnp.float32)
        shift = bn_beta.astype(jnp.float32) + scale * (bias - bn_mean.astype(jnp.float32))
    else:
        scale = jnp.ones((Cout,), jnp.float32)
        shift = jnp.zeros((Cout,), jnp.float32) if conv_bias is None else conv_bias.astype(jnp.float32)
    scale = jnp.pad(scale, (0, Cout_p - Cout)).reshape(1, Cout_p)
    shift = jnp.pad(shift, (0, Cout_p - Cout)).reshape(1, Cout_p)

    # Layout glue: NCHW -> NHWC, bf16 at the HBM boundary. NOTE: no jnp.pad here — padding
    # happens inside the kernel in VMEM. TODO(synk): fold this transpose into the kernel too.
    x_nhwc = jnp.transpose(x_nchw, (0, 2, 3, 1)).astype(compute_dtype)

    kernel = functools.partial(
        _basic_conv_kernel,
        KH=KH, KW=KW, H=H, W=W, H_out=H_out, W_out=W_out, Cin=Cin,
        stride=stride, padding=padding, dilation=dilation, relu=relu)

    out_flat = pl.pallas_call(
        kernel,
        out_shape=jax.ShapeDtypeStruct((N, M, Cout_p), jnp.float32),
        grid_spec=pltpu.PrefetchScalarGridSpec(
            num_scalar_prefetch=0,
            grid=(N, n_cout_tiles),
            in_specs=[
                pl.BlockSpec((1, H, W, Cin), lambda n, j: (n, 0, 0, 0)),
                pl.BlockSpec((K, cout_tile), lambda n, j: (0, j)),
                pl.BlockSpec((1, cout_tile), lambda n, j: (0, j)),
                pl.BlockSpec((1, cout_tile), lambda n, j: (0, j)),
            ],
            out_specs=pl.BlockSpec((1, M, cout_tile), lambda n, j: (n, 0, j)),
            scratch_shapes=[
                pltpu.VMEM((Hp, Wp, Cin), jnp.float32),   # padded activation
                pltpu.VMEM((M, K), jnp.float32),          # im2col patches
            ],
        ),
        compiler_params=pltpu.CompilerParams(
            dimension_semantics=("parallel", "parallel"),
            vmem_limit_bytes=32 * 1024 * 1024),
    )(x_nhwc, w_mat, scale, shift)

    # Glue: drop Cout padding, back to NCHW.
    out = out_flat.reshape(N, H_out, W_out, Cout_p)[..., :Cout]
    return jnp.transpose(out, (0, 3, 1, 2))


def _reference(x, w, gamma, beta, mean, var, *, stride, padding, dilation, eps,
               compute_dtype=jnp.float32):
    # Match the kernel's input rounding (bf16 MXU inputs) but accumulate in f32.
    xc = x.astype(compute_dtype).astype(jnp.float32)
    wc = w.astype(compute_dtype).astype(jnp.float32)
    y = lax.conv_general_dilated(
        xc, wc,
        window_strides=(stride, stride),
        padding=[(padding, padding), (padding, padding)],
        rhs_dilation=(dilation, dilation),
        dimension_numbers=("NCHW", "OIHW", "NCHW"),
        precision=lax.Precision.HIGHEST)
    scale = (gamma / jnp.sqrt(var + eps)).reshape(1, -1, 1, 1)
    shift = (beta - mean * gamma / jnp.sqrt(var + eps)).reshape(1, -1, 1, 1)
    return jnp.maximum(y * scale + shift, 0.0)


if __name__ == "__main__":
    key = jax.random.PRNGKey(0)
    k_x, k_w, k_g, k_b, k_m, k_v = jax.random.split(key, 6)

    # BasicConv(in_planes=4, out_planes=8, kernel_size=3, stride=1, padding=1)
    N, Cin, H, W = 2, 4, 16, 16
    Cout, Kk = 8, 3
    stride, padding, dilation, eps = 1, 1, 1, 1e-5

    x = jax.random.normal(k_x, (N, Cin, H, W), jnp.float32)
    weight = jax.random.normal(k_w, (Cout, Cin, Kk, Kk), jnp.float32) * 0.1
    bn_gamma = 1.0 + 0.1 * jax.random.normal(k_g, (Cout,), jnp.float32)
    bn_beta = 0.1 * jax.random.normal(k_b, (Cout,), jnp.float32)
    bn_mean = 0.1 * jax.random.normal(k_m, (Cout,), jnp.float32)
    bn_var = jnp.abs(jax.random.normal(k_v, (Cout,), jnp.float32)) + 0.5

    out = basic_conv_forward(
        x, weight, bn_gamma, bn_beta, bn_mean, bn_var,
        stride=stride, padding=padding, dilation=dilation, eps=eps,
        relu=True, bn=True)
    out = jax.block_until_ready(out)

    ref = _reference(x, weight, bn_gamma, bn_beta, bn_mean, bn_var,
                     stride=stride, padding=padding, dilation=dilation, eps=eps,
                     compute_dtype=jnp.bfloat16)
    assert out.shape == (N, Cout, H, W), out.shape
    max_err = float(jnp.max(jnp.abs(out - ref)))
    assert jnp.allclose(out, ref, atol=2e-2, rtol=2e-2), f"mismatch vs lax reference, max_err={max_err}"

    print("KERNEL_OK")
</pallas_src>

<mosaic_0001>
module attributes {stable_mosaic.version = 11 : i64} {
  func.func @_basic_conv_kernel(%arg0: i32, %arg1: i32, %arg2: memref<1x16x16x4xbf16, #tpu.memory_space<vmem>>, %arg3: memref<36x128xbf16, #tpu.memory_space<vmem>>, %arg4: memref<1x128xf32, #tpu.memory_space<vmem>>, %arg5: memref<1x128xf32, #tpu.memory_space<vmem>>, %arg6: memref<1x256x128xf32, #tpu.memory_space<vmem>>, %arg7: memref<18x18x4xf32, #tpu.memory_space<vmem>>, %arg8: memref<256x36xf32, #tpu.memory_space<vmem>>) attributes {dimension_semantics = [#tpu.dimension_semantics<parallel>, #tpu.dimension_semantics<parallel>], iteration_bounds = array<i64: 2, 1>, scalar_prefetch = 0 : i64, scratch_operands = 2 : i64, tpu.core_type = #tpu.core_type<tc>, window_params = [{transform_indices = @transform_0, window_bounds = array<i64: 1, 16, 16, 4>}, {transform_indices = @transform_1, window_bounds = array<i64: 36, 128>}, {transform_indices = @transform_2, window_bounds = array<i64: 1, 128>}, {transform_indices = @transform_3, window_bounds = array<i64: 1, 128>}, {transform_indices = @transform_4, window_bounds = array<i64: 1, 256, 128>}]} {
    %cst = arith.constant 0.000000e+00 : f32
    %0 = vector.broadcast %cst : f32 to vector<18x18x4xf32>
    %c0 = arith.constant 0 : index
    %c0_0 = arith.constant 0 : index
    %c0_1 = arith.constant 0 : index
    %1 = vector.load %arg7[%c0, %c0_0, %c0_1] : memref<18x18x4xf32, #tpu.memory_space<vmem>>, vector<18x18x4xf32>
    tpu.vector_store %arg7[%c0, %c0_0, %c0_1], %0 {strides = array<i32>} : memref<18x18x4xf32, #tpu.memory_space<vmem>>, vector<18x18x4xf32>,
    %c0_2 = arith.constant 0 : index
    %c0_3 = arith.constant 0 : index
    %c0_4 = arith.constant 0 : index
    %c0_5 = arith.constant 0 : index
    %2 = vector.load %arg2[%c0_2, %c0_3, %c0_4, %c0_5] : memref<1x16x16x4xbf16, #tpu.memory_space<vmem>>, vector<1x16x16x4xbf16>
    %3 = vector.shape_cast %2 : vector<1x16x16x4xbf16> to vector<16x16x4xbf16>
    %4 = arith.extf %3 : vector<16x16x4xbf16> to vector<16x16x4xf32>
    %c1 = arith.constant 1 : index
    %c1_6 = arith.constant 1 : index
    %c0_7 = arith.constant 0 : index
    %5 = vector.load %arg7[%c1, %c1_6, %c0_7] : memref<18x18x4xf32, #tpu.memory_space<vmem>>, vector<16x16x4xf32>
    tpu.vector_store %arg7[%c1, %c1_6, %c0_7], %4 {strides = array<i32>} : memref<18x18x4xf32, #tpu.memory_space<vmem>>, vector<16x16x4xf32>,
    %c0_8 = arith.constant 0 : index
    %c0_9 = arith.constant 0 : index
    %c0_10 = arith.constant 0 : index
    %6 = vector.load %arg7[%c0_8, %c0_9, %c0_10] : memref<18x18x4xf32, #tpu.memory_space<vmem>>, vector<16x16x4xf32>
    %7 = vector.shape_cast %6 : vector<16x16x4xf32> to vector<256x4xf32>
    %c0_11 = arith.constant 0 : index
    %c0_12 = arith.constant 0 : index
    %8 = vector.load %arg8[%c0_11, %c0_12] : memref<256x36xf32, #tpu.memory_space<vmem>>, vector<256x4xf32>
    tpu.vector_store %arg8[%c0_11, %c0_12], %7 {strides = array<i32>} : memref<256x36xf32, #tpu.memory_space<vmem>>, vector<256x4xf32>,
    %c0_13 = arith.constant 0 : index
    %c1_14 = arith.constant 1 : index
    %c0_15 = arith.constant 0 : index
    %9 = vector.load %arg7[%c0_13, %c1_14, %c0_15] : memref<18x18x4xf32, #tpu.memory_space<vmem>>, vector<16x16x4xf32>
    %10 = vector.shape_cast %9 : vector<16x16x4xf32> to vector<256x4xf32>
    %c0_16 = arith.constant 0 : index
    %c4 = arith.constant 4 : index
    %11 = vector.load %arg8[%c0_16, %c4] : memref<256x36xf32, #tpu.memory_space<vmem>>, vector<256x4xf32>
    tpu.vector_store %arg8[%c0_16, %c4], %10 {strides = array<i32>} : memref<256x36xf32, #tpu.memory_space<vmem>>, vector<256x4xf32>,
    %c0_17 = arith.constant 0 : index
    %c2 = arith.constant 2 : index
    %c0_18 = arith.constant 0 : index
    %12 = vector.load %arg7[%c0_17, %c2, %c0_18] : memref<18x18x4xf32, #tpu.memory_space<vmem>>, vector<16x16x4xf32>
    %13 = vector.shape_cast %12 : vector<16x16x4xf32> to vector<256x4xf32>
    %c0_19 = arith.constant 0 : index
    %c8 = arith.constant 8 : index
    %14 = vector.load %arg8[%c0_19, %c8] : memref<256x36xf32, #tpu.memory_space<vmem>>, vector<256x4xf32>
    tpu.vector_store %arg8[%c0_19, %c8], %13 {strides = array<i32>} : memref<256x36xf32, #tpu.memory_space<vmem>>, vector<256x4xf32>,
    %c1_20 = arith.constant 1 : index
    %c0_21 = arith.constant 0 : index
    %c0_22 = arith.constant 0 : index
    %15 = vector.load %arg7[%c1_20, %c0_21, %c0_22] : memref<18x18x4xf32, #tpu.memory_space<vmem>>, vector<16x16x4xf32>
    %16 = vector.shape_cast %15 : vector<16x16x4xf32> to vector<256x4xf32>
    %c0_23 = arith.constant 0 : index
    %c12 = arith.constant 12 : index
    %17 = vector.load %arg8[%c0_23, %c12] : memref<256x36xf32, #tpu.memory_space<vmem>>, vector<256x4xf32>
    tpu.vector_store %arg8[%c0_23, %c12], %16 {strides = array<i32>} : memref<256x36xf32, #tpu.memory_space<vmem>>, vector<256x4xf32>,
    %c1_24 = arith.constant 1 : index
    %c1_25 = arith.constant 1 : index
    %c0_26 = arith.constant 0 : index
    %18 = vector.load %arg7[%c1_24, %c1_25, %c0_26] : memref<18x18x4xf32, #tpu.memory_space<vmem>>, vector<16x16x4xf32>
    %19 = vector.shape_cast %18 : vector<16x16x4xf32> to vector<256x4xf32>
    %c0_27 = arith.constant 0 : index
    %c16 = arith.constant 16 : index
    %20 = vector.load %arg8[%c0_27, %c16] : memref<256x36xf32, #tpu.memory_space<vmem>>, vector<256x4xf32>
    tpu.vector_store %arg8[%c0_27, %c16], %19 {strides = array<i32>} : memref<256x36xf32, #tpu.memory_space<vmem>>, vector<256x4xf32>,
    %c1_28 = arith.constant 1 : index
    %c2_29 = arith.constant 2 : index
    %c0_30 = arith.constant 0 : index
    %21 = vector.load %arg7[%c1_28, %c2_29, %c0_30] : memref<18x18x4xf32, #tpu.memory_space<vmem>>, vector<16x16x4xf32>
    %22 = vector.shape_cast %21 : vector<16x16x4xf32> to vector<256x4xf32>
    %c0_31 = arith.constant 0 : index
    %c20 = arith.constant 20 : index
    %23 = vector.load %arg8[%c0_31, %c20] : memref<256x36xf32, #tpu.memory_space<vmem>>, vector<256x4xf32>
    tpu.vector_store %arg8[%c0_31, %c20], %22 {strides = array<i32>} : memref<256x36xf32, #tpu.memory_space<vmem>>, vector<256x4xf32>,
    %c2_32 = arith.constant 2 : index
    %c0_33 = arith.constant 0 : index
    %c0_34 = arith.constant 0 : index
    %24 = vector.load %arg7[%c2_32, %c0_33, %c0_34] : memref<18x18x4xf32, #tpu.memory_space<vmem>>, vector<16x16x4xf32>
    %25 = vector.shape_cast %24 : vector<16x16x4xf32> to vector<256x4xf32>
    %c0_35 = arith.constant 0 : index
    %c24 = arith.constant 24 : index
    %26 = vector.load %arg8[%c0_35, %c24] : memref<256x36xf32, #tpu.memory_space<vmem>>, vector<256x4xf32>
    tpu.vector_store %arg8[%c0_35, %c24], %25 {strides = array<i32>} : memref<256x36xf32, #tpu.memory_space<vmem>>, vector<256x4xf32>,
    %c2_36 = arith.constant 2 : index
    %c1_37 = arith.constant 1 : index
    %c0_38 = arith.constant 0 : index
    %27 = vector.load %arg7[%c2_36, %c1_37, %c0_38] : memref<18x18x4xf32, #tpu.memory_space<vmem>>, vector<16x16x4xf32>
    %28 = vector.shape_cast %27 : vector<16x16x4xf32> to vector<256x4xf32>
    %c0_39 = arith.constant 0 : index
    %c28 = arith.constant 28 : index
    %29 = vector.load %arg8[%c0_39, %c28] : memref<256x36xf32, #tpu.memory_space<vmem>>, vector<256x4xf32>
    tpu.vector_store %arg8[%c0_39, %c28], %28 {strides = array<i32>} : memref<256x36xf32, #tpu.memory_space<vmem>>, vector<256x4xf32>,
    %c2_40 = arith.constant 2 : index
    %c2_41 = arith.constant 2 : index
    %c0_42 = arith.constant 0 : index
    %30 = vector.load %arg7[%c2_40, %c2_41, %c0_42] : memref<18x18x4xf32, #tpu.memory_space<vmem>>, vector<16x16x4xf32>
    %31 = vector.shape_cast %30 : vector<16x16x4xf32> to vector<256x4xf32>
    %c0_43 = arith.constant 0 : index
    %c32 = arith.constant 32 : index
    %32 = vector.load %arg8[%c0_43, %c32] : memref<256x36xf32, #tpu.memory_space<vmem>>, vector<256x4xf32>
    tpu.vector_store %arg8[%c0_43, %c32], %31 {strides = array<i32>} : memref<256x36xf32, #tpu.memory_space<vmem>>, vector<256x4xf32>,
    %c0_44 = arith.constant 0 : index
    %c0_45 = arith.constant 0 : index
    %33 = vector.load %arg8[%c0_44, %c0_45] : memref<256x36xf32, #tpu.memory_space<vmem>>, vector<256x36xf32>
    %34 = arith.truncf %33 : vector<256x36xf32> to vector<256x36xbf16>
    %c0_46 = arith.constant 0 : index
    %c0_47 = arith.constant 0 : index
    %35 = vector.load %arg3[%c0_46, %c0_47] : memref<36x128xbf16, #tpu.memory_space<vmem>>, vector<36x128xbf16>
    %cst_48 = arith.constant dense<0.000000e+00> : vector<256x128xf32>
    %36 = tpu.matmul %34, %35, %cst_48 {dimension_numbers = #tpu.dot_dimension_numbers<[1], [0], [0], [1], [0, 0, 1, 1], [], []>} : vector<256x36xbf16>, vector<36x128xbf16>, vector<256x128xf32> -> vector<256x128xf32>
    %c0_49 = arith.constant 0 : index
    %c0_50 = arith.constant 0 : index
    %37 = vector.load %arg4[%c0_49, %c0_50] : memref<1x128xf32, #tpu.memory_space<vmem>>, vector<1x128xf32>
    %38 = vector.shape_cast %37 : vector<1x128xf32> to vector<128xf32>
    %39 = vector.shape_cast %38 : vector<128xf32> to vector<1x128xf32>
    %40 = vector.broadcast %39 : vector<1x128xf32> to vector<256x128xf32>
    %41 = arith.mulf %36, %40 : vector<256x128xf32>
    %c0_51 = arith.constant 0 : index
    %c0_52 = arith.constant 0 : index
    %42 = vector.load %arg5[%c0_51, %c0_52] : memref<1x128xf32, #tpu.memory_space<vmem>>, vector<1x128xf32>
    %43 = vector.shape_cast %42 : vector<1x128xf32> to vector<128xf32>
    %44 = vector.shape_cast %43 : vector<128xf32> to vector<1x128xf32>
    %45 = vector.broadcast %44 : vector<1x128xf32> to vector<256x128xf32>
    %46 = arith.addf %41, %45 : vector<256x128xf32>
    %cst_53 = arith.constant 0.000000e+00 : f32
    %47 = vector.broadcast %cst_53 : f32 to vector<256x128xf32>
    %48 = arith.maximumf %46, %47 : vector<256x128xf32>
    %c0_54 = arith.constant 0 : index
    %c0_55 = arith.constant 0 : index
    %c0_56 = arith.constant 0 : index
    %49 = vector.load %arg6[%c0_54, %c0_55, %c0_56] : memref<1x256x128xf32, #tpu.memory_space<vmem>>, vector<1x256x128xf32>
    %50 = vector.shape_cast %49 : vector<1x256x128xf32> to vector<256x128xf32>
    %51 = vector.shape_cast %48 : vector<256x128xf32> to vector<1x256x128xf32>
    tpu.vector_store %arg6[%c0_54, %c0_55, %c0_56], %51 {strides = array<i32>} : memref<1x256x128xf32, #tpu.memory_space<vmem>>, vector<1x256x128xf32>,
    return
  }
  func.func @transform_0(%arg0: i32, %arg1: i32) -> (i32, i32, i32, i32) {
    %c0_i32 = arith.constant 0 : i32
    %c0_i32_0 = arith.constant 0 : i32
    %c0_i32_1 = arith.constant 0 : i32
    %c0_i32_2 = arith.constant 0 : i32
    return %arg0, %c0_i32, %c0_i32_0, %c0_i32_1 : i32, i32, i32, i32
  }
  func.func @transform_1(%arg0: i32, %arg1: i32) -> (i32, i32) {
    %c0_i32 = arith.constant 0 : i32
    %c0_i32_0 = arith.constant 0 : i32
    return %c0_i32, %arg1 : i32, i32
  }
  func.func @transform_2(%arg0: i32, %arg1: i32) -> (i32, i32) {
    %c0_i32 = arith.constant 0 : i32
    %c0_i32_0 = arith.constant 0 : i32
    return %c0_i32, %arg1 : i32, i32
  }
  func.func @transform_3(%arg0: i32, %arg1: i32) -> (i32, i32) {
    %c0_i32 = arith.constant 0 : i32
    %c0_i32_0 = arith.constant 0 : i32
    return %c0_i32, %arg1 : i32, i32
  }
  func.func @transform_4(%arg0: i32, %arg1: i32) -> (i32, i32, i32) {
    %c0_i32 = arith.constant 0 : i32
    %c0_i32_0 = arith.constant 0 : i32
    return %arg0, %c0_i32, %arg1 : i32, i32, i32
  }
}

</mosaic_0001>

<bundles_post_ra>
// kernel: tpu_custom_call.1
= control target key start
LH: loop header
LB: loop body
LE: loop exit
PB: predicated region body
PF: predicated region fallthrough
CT: control target
= control target key end

     0   :  { %9 = vsyncpa [#allocation5], 0  ;;  %s4139_s0 = inlined_call_operand.vmem [shape: bf16[2,16,16,4], index: 0, kind: input, shape index: {}]   ;;  %s4140_s1 = inlined_call_operand.vmem [shape: bf16[36,128], index: 1, kind: input, shape index: {}]   ;;  %s4141_s2 = inlined_call_operand.vmem [shape: f32[1,128], index: 2, kind: input, shape index: {}]   ;;  %s4142_s3 = inlined_call_operand.vmem [shape: f32[1,128], index: 3, kind: input, shape index: {}]   ;;  %s4143_s4 = inlined_call_operand.hbm [shape: f32[2,256,128], index: 4, kind: output, shape index: {}]  }
   0x1   :  { %11 = vsyncpa [#allocation5 + $0x1], 0  ;;  %s2806_s15 = smov 0   ;;  %s2808_s16 = smov 0  }
   0x2   :  { %s2810_s17 = smov 0   ;;  %s2812_s18 = smov 0  }
   0x3   :  { %s2814_s19 = smov 0   ;;  %s2816_s20 = smov 0  }
   0x4 LB: > { %s2492_s21 = sadd.s32 4294967295, %s2769_s20   ;;  %s2493_s22 = sadd.s32 4294967294, %s2769_s20   ;;  %s2769_s20 = sphi %s2816_s20, %s17_s20   ;;  %s2765_s19 = sphi %s2814_s19, %s4237_s19   ;;  %s2761_s18 = sphi %s2812_s18, %s4236_s18   ;;  %s2757_s17 = sphi %s2810_s17, %s4235_s17   ;;  %s2753_s16 = sphi %s2808_s16, %s4234_s16   ;;  %s2749_s15 = sphi %s2806_s15, %s4233_s15  }
   0x5   : > { %s29_s23 = sadd.s32 1, %s2765_s19  ;;  %s142_s24 = sadd.s32 1, %s2757_s17 }
   0x6   : > { %p31_p0 = scmp.ge.s32.totalorder %s29_s23, 2  ;;  %p152_p1 = scmp.ne.s32.totalorder %s2757_s17, %s2753_s16 }
   0x7   : > { %p153_p2 = scmp.eq.s32.totalorder %s2492_s21, 1  ;;  %p158_p3 = scmp.ne.s32.totalorder %s2753_s16, %s2749_s15 }
   0x8   : > { %s4239_s23 = smov (%p31_p0, %s29_s23), 0  ;;  %p159_p5 = scmp.eq.s32.totalorder %s2493_s22, 1 }
   0x9   : > { %p2846_p4 = por %p153_p2, %p152_p1  ;;  %s137_s26 = ssub.s32 %s2765_s19, %s4239_s23 }
   0xa   : > { %p2499_p6 = scmp.ge.s32.totalorder %s2769_s20, 1  ;;  %p140_p7 = scmp.eq.s32.totalorder %s137_s26, 0 }
   0xb   : > { %p2853_p8 = por %p159_p5, %p158_p3  ;;  %p204_p9 = scmp.lt.s32.totalorder %s2769_s20, 3 }
   0xc   : > { %s2859_s28 = scalar_select %p140_p7, %s2757_s17, %s142_s24  }
   0xd   : > { %p205_p10 = pnand %p2499_p6, %p204_p9 }
   0xf   : > { %208 = sbr.rel (%p205_p10) target bundleno = 1025 (0x401), region = 36 }
  0x14   : > { %vm256_vm0 = vcmask 31744   ;;  %v2771_v0 = vmov 0.0   ;;  %s2772_s29 = smov 4   ;;  %vm259_vm1 = vcmask 25600   ;;  %p240_p11 = scmp.lt.s32.totalorder %s2761_s18, 1  ;;  %vm633_vm2 = vcmask 64544  }
  0x15   : > { %257 = vst.msk [vmem:[#allocation2] sm:$0xff] %vm256_vm0, %v2771_v0  ;;  %s2773_s9 = smov 8   ;;  %s2774_s10 = smov 12   ;;  %vm826_vm3 = vcmask 97344   ;;  %vm1019_vm4 = vcmask 130144   ;;  %vm1212_vm5 = vcmask 162944  }
  0x16   : > { %258 = vst.msk [vmem:[#allocation2 + $0x8] sm:$0xff] %vm256_vm0, %v2771_v0  ;;  %s241_s30 = scalar_select %p240_p11, %s2761_s18, 1  ;;  %vm1405_vm6 = vcmask 195744   ;;  %vm1599_vm7 = vcmask 228544   ;;  %vm2135_vm8 = vcmask 1041408   ;;  %vm1792_vm9 = vcmask 261344  }
  0x17   : > { %261 = vst.msk [vmem:[#allocation2 + $0x18] sm:$0xff] %vm256_vm0, %v2771_v0  ;;  %s2775_s11 = smov 16   ;;  %s2776_s12 = smov 20   ;;  %vm1985_vm10 = vcmask 294144   ;;  %vm2086_vm11 = vcmask 293888  }
  0x18   : > { %262 = vst.msk [vmem:[#allocation2 + $0x20] sm:$0xff] %vm256_vm0, %v2771_v0  ;;  %s2532_s5 = sshll.u32 %s241_s30, 7  ;;  %s2777_s13 = smov 24  }
  0x19   : > { %264 = vst.msk [vmem:[#allocation2 + $0x30] sm:$0xff] %vm256_vm0, %v2771_v0  ;;  %s2958_s8 = scalar_lea.vmem %s4139_s0, %s2532_s5  ;;  %s2778_s14 = smov 28  }
  0x1a   : > { %265 = vst.msk [vmem:[#allocation2 + $0x38] sm:$0xff] %vm256_vm0, %v2771_v0  ;;  %v2537_v3 = vld [vmem:[%s2958_s8] sm:$0xff]   ;;  %v2601_v4 = vld [vmem:[%s2958_s8 + $0x10] sm:$0xff]   ;;  %v2602_v6 = vld [vmem:[%s2958_s8 + $0x18] sm:$0xff]   ;;  %s2779_s21 = smov 32  }
  0x1b   : > { %267 = vst.msk [vmem:[#allocation2 + $0x48] sm:$0xff] %vm256_vm0, %v2771_v0  ;;  %v2538_v5 = vunpack.c.l.bf16 %v2537_v3  ;;  %v2546_v7 = vunpack.c.l.bf16 %v2601_v4  ;;  %v2539_v8 = vunpack.c.h.bf16 %v2537_v3  ;;  %v2604_v9 = vld [vmem:[%s2958_s8 + $0x28] sm:$0xff]   ;;  %v2551_v10 = vunpack.c.h.bf16 %v2602_v6  ;;  %v2603_v13 = vld [vmem:[%s2958_s8 + $0x20] sm:$0xff]   ;;  %v2605_v15 = vld [vmem:[%s2958_s8 + $0x30] sm:$0xff]  }
  0x1c   : > { %268 = vst.msk [vmem:[#allocation2 + $0x50] sm:$0xff] %vm256_vm0, %v2771_v0  ;;  %v2600_v11 = vld [vmem:[%s2958_s8 + $0x8] sm:$0xff]   ;;  %v2547_v12 = vunpack.c.h.bf16 %v2601_v4  ;;  %v2558_v14 = vunpack.c.l.bf16 %v2604_v9  ;;  %v2554_v17 = vunpack.c.l.bf16 %v2603_v13  ;;  %v2563_v18 = vunpack.c.h.bf16 %v2605_v15  ;;  %v2607_v20 = vld [vmem:[%s2958_s8 + $0x40] sm:$0xff]   ;;  %v2606_v22 = vld [vmem:[%s2958_s8 + $0x38] sm:$0xff]  }
  0x1d   : > { %v473_v1 = vld [vmem:[#allocation2 + $0x1] sm:$0xff]  ;;  %270 = vst.msk [vmem:[#allocation2 + $0x60] sm:$0xff] %vm256_vm0, %v2771_v0  ;;  %v2542_v16 = vunpack.c.l.bf16 %v2600_v11  ;;  %v2543_v19 = vunpack.c.h.bf16 %v2600_v11  ;;  %v2559_v21 = vunpack.c.h.bf16 %v2604_v9  ;;  %v2570_v24 = vunpack.c.l.bf16 %v2607_v20  ;;  %v2610_v37 = vld [vmem:[%s2958_s8 + $0x58] sm:$0xff]   ;;  %v2609_v38 = vld [vmem:[%s2958_s8 + $0x50] sm:$0xff]  }
  0x1e   : > { %537 = vrot.lane.b32.xlu0 %v473_v1, %s2772_s29  ;;  %271 = vst.msk [vmem:[#allocation2 + $0x68] sm:$0xff] %vm256_vm0, %v2771_v0  ;;  %v2550_v26 = vunpack.c.l.bf16 %v2602_v6  ;;  %v2566_v27 = vunpack.c.l.bf16 %v2606_v22  ;;  %v2608_v30 = vld [vmem:[%s2958_s8 + $0x48] sm:$0xff]   ;;  %v2555_v33 = vunpack.c.h.bf16 %v2603_v13  ;;  %v2571_v34 = vunpack.c.h.bf16 %v2607_v20  ;;  %v2611_v45 = vld [vmem:[%s2958_s8 + $0x60] sm:$0xff]   ;;  %v2613_v52 = vld [vmem:[%s2958_s8 + $0x70] sm:$0xff]  }
  0x1f   : > { %273 = vst.msk [vmem:[#allocation2 + $0x78] sm:$0xff] %vm256_vm0, %v2771_v0  ;;  %v2575_v32 = vunpack.c.h.bf16 %v2608_v30  ;;  %v2582_v40 = vunpack.c.l.bf16 %v2610_v37  ;;  %v2562_v41 = vunpack.c.l.bf16 %v2605_v15  ;;  %v2578_v42 = vunpack.c.l.bf16 %v2609_v38  ;;  %v2612_v53 = vld [vmem:[%s2958_s8 + $0x68] sm:$0xff]  }
  0x20   : > { %274 = vst.msk [vmem:[#allocation2 + $0x80] sm:$0xff] %vm256_vm0, %v2771_v0  ;;  %v2587_v47 = vunpack.c.h.bf16 %v2611_v45  ;;  %v2567_v48 = vunpack.c.h.bf16 %v2606_v22  ;;  %v2583_v49 = vunpack.c.h.bf16 %v2610_v37  ;;  %v2594_v55 = vunpack.c.l.bf16 %v2613_v52 }
  0x21   : > { %276 = vst.msk [vmem:[#allocation2 + $0x90] sm:$0xff] %vm256_vm0, %v2771_v0  ;;  %v2574_v56 = vunpack.c.l.bf16 %v2608_v30  ;;  %v2590_v57 = vunpack.c.l.bf16 %v2612_v53  ;;  %v2579_v61 = vunpack.c.h.bf16 %v2609_v38  ;;  %v2595_v62 = vunpack.c.h.bf16 %v2613_v52 }
  0x22   : > { %277 = vst.msk [vmem:[#allocation2 + $0x98] sm:$0xff] %vm256_vm0, %v2771_v0  ;;  %v2591_v6 = vunpack.c.h.bf16 %v2612_v53 }
  0x23   : > { %279 = vst.msk [vmem:[#allocation2 + $0xa8] sm:$0xff] %vm256_vm0, %v2771_v0 }
  0x24   : > { %280 = vst.msk [vmem:[#allocation2 + $0xb0] sm:$0xff] %vm256_vm0, %v2771_v0 }
  0x25   : > { %282 = vst.msk [vmem:[#allocation2 + $0xc0] sm:$0xff] %vm256_vm0, %v2771_v0 }
  0x26   : > { %283 = vst.msk [vmem:[#allocation2 + $0xc8] sm:$0xff] %vm256_vm0, %v2771_v0 }
  0x27   : > { %285 = vst.msk [vmem:[#allocation2 + $0xd8] sm:$0xff] %vm256_vm0, %v2771_v0 }
  0x28   : > { %286 = vst.msk [vmem:[#allocation2 + $0xe0] sm:$0xff] %vm256_vm0, %v2771_v0 }
  0x29   : > { %288 = vst.msk [vmem:[#allocation2 + $0xf0] sm:$0xff] %vm256_vm0, %v2771_v0 }
  0x2a   : > { %289 = vst.msk [vmem:[#allocation2 + $0xf8] sm:$0xff] %vm256_vm0, %v2771_v0 }
  0x2b   : > { %291 = vst.msk [vmem:[#allocation2 + $0x108] sm:$0xff] %vm256_vm0, %v2771_v0 }
  0x2c   : > { %292 = vst.msk [vmem:[#allocation2 + $0x110] sm:$0xff] %vm256_vm0, %v2771_v0 }
  0x2d   : > { %294 = vst.msk [vmem:[#allocation2 + $0x120] sm:$0xff] %vm256_vm0, %v2771_v0 }
  0x2e   : > { %295 = vst.msk [vmem:[#allocation2 + $0x128] sm:$0xff] %vm256_vm0, %v2771_v0 }
  0x2f   : > { %297 = vst.msk [vmem:[#allocation2 + $0x138] sm:$0xff] %vm256_vm0, %v2771_v0 }
  0x30   : > { %298 = vst.msk [vmem:[#allocation2 + $0x140] sm:$0xff] %vm256_vm0, %v2771_v0 }
  0x31   : > { %300 = vst.msk [vmem:[#allocation2 + $0x150] sm:$0xff] %vm256_vm0, %v2771_v0 }
  0x32   : > { %301 = vst.msk [vmem:[#allocation2 + $0x158] sm:$0xff] %vm256_vm0, %v2771_v0 }
  0x33   : > { %303 = vst.msk [vmem:[#allocation2 + $0x168] sm:$0xff] %vm256_vm0, %v2771_v0 }
  0x34   : > { %304 = vst.msk [vmem:[#allocation2 + $0x170] sm:$0xff] %vm256_vm0, %v2771_v0 }
  0x35   : > { %306 = vst.msk [vmem:[#allocation2 + $0x180] sm:$0xff] %vm256_vm0, %v2771_v0 }
  0x36   : > { %307 = vst.msk [vmem:[#allocation2 + $0x188] sm:$0xff] %vm256_vm0, %v2771_v0 }
  0x37   : > { %309 = vst.msk [vmem:[#allocation2 + $0x198] sm:$0xff] %vm256_vm0, %v2771_v0 }
  0x38   : > { %310 = vst.msk [vmem:[#allocation2 + $0x1a0] sm:$0xff] %vm256_vm0, %v2771_v0 }
  0x39   : > { %260 = vst.msk [vmem:[#allocation2 + $0x10] sm:$0x3] %vm259_vm1, %v2771_v0 }
  0x3a   : > { %263 = vst.msk [vmem:[#allocation2 + $0x28] sm:$0x3] %vm259_vm1, %v2771_v0 }
  0x3b   : > { %266 = vst.msk [vmem:[#allocation2 + $0x40] sm:$0x3] %vm259_vm1, %v2771_v0 }
  0x3c   : > { %269 = vst.msk [vmem:[#allocation2 + $0x58] sm:$0x3] %vm259_vm1, %v2771_v0 }
  0x3d   : > { %272 = vst.msk [vmem:[#allocation2 + $0x70] sm:$0x3] %vm259_vm1, %v2771_v0 }
  0x3e   : > { %275 = vst.msk [vmem:[#allocation2 + $0x88] sm:$0x3] %vm259_vm1, %v2771_v0 }
  0x3f   : > { %278 = vst.msk [vmem:[#allocation2 + $0xa0] sm:$0x3] %vm259_vm1, %v2771_v0 }
  0x40   : > { %v474_v2 = vld [vmem:[#allocation2 + $0x9] sm:$0xff]  ;;  %281 = vst.msk [vmem:[#allocation2 + $0xb8] sm:$0x3] %vm259_vm1, %v2771_v0 }
  0x41   : > { %539 = vrot.lane.b32.xlu0 %v474_v2, %s2772_s29  ;;  %284 = vst.msk [vmem:[#allocation2 + $0xd0] sm:$0x3] %vm259_vm1, %v2771_v0  ;;  %v2586_v2 = vunpack.c.l.bf16 %v2611_v45 }
  0x42   : > { %287 = vst.msk [vmem:[#allocation2 + $0xe8] sm:$0x3] %vm259_vm1, %v2771_v0 }
  0x43   : > { %290 = vst.msk [vmem:[#allocation2 + $0x100] sm:$0x3] %vm259_vm1, %v2771_v0 }
  0x44   : > { %293 = vst.msk [vmem:[#allocation2 + $0x118] sm:$0x3] %vm259_vm1, %v2771_v0 }
  0x45   : > { %296 = vst.msk [vmem:[#allocation2 + $0x130] sm:$0x3] %vm259_vm1, %v2771_v0 }
  0x46   : > { %299 = vst.msk [vmem:[#allocation2 + $0x148] sm:$0x3] %vm259_vm1, %v2771_v0 }
  0x47   : > { %302 = vst.msk [vmem:[#allocation2 + $0x160] sm:$0x3] %vm259_vm1, %v2771_v0 }
  0x48   : > { %305 = vst.msk [vmem:[#allocation2 + $0x178] sm:$0x3] %vm259_vm1, %v2771_v0 }
  0x49   : > { %308 = vst.msk [vmem:[#allocation2 + $0x190] sm:$0x3] %vm259_vm1, %v2771_v0 }
  0x4a   : > { %311 = vst.msk [vmem:[#allocation2 + $0x1a8] sm:$0x3] %vm259_vm1, %v2771_v0 }
  0x4b   : > { %377 = vst.msk [vmem:[#allocation2 + $0x19] sm:$0xff] %vm256_vm0, %v2538_v5 }
  0x4c   : > { %381 = vst.msk [vmem:[#allocation2 + $0x49] sm:$0xff] %vm256_vm0, %v2546_v7 }
  0x4d   : > { %378 = vst.msk [vmem:[#allocation2 + $0x21] sm:$0xff] %vm256_vm0, %v2539_v8 }
  0x4e   : > { %384 = vst.msk [vmem:[#allocation2 + $0x69] sm:$0xff] %vm256_vm0, %v2551_v10 }
  0x4f   : > { %382 = vst.msk [vmem:[#allocation2 + $0x51] sm:$0xff] %vm256_vm0, %v2547_v12  ;;  %v667_v12 = vld [vmem:[#allocation2 + $0xa] sm:$0xff] }
  0x50   : > { %387 = vst.msk [vmem:[#allocation2 + $0x91] sm:$0xff] %vm256_vm0, %v2558_v14  ;;  %v409_v14 = vld [vmem:[#allocation2] sm:$0xff] }
  0x51   : > { %379 = vst.msk [vmem:[#allocation2 + $0x31] sm:$0xff] %vm256_vm0, %v2542_v16 }
  0x52   : > { %v2994_v23 = vld [vmem:[#allocation2 + $0x19] sm:$0xff]  ;;  %385 = vst.msk [vmem:[#allocation2 + $0x79] sm:$0xff] %vm256_vm0, %v2554_v17 }
  0x53   : > { %541 = vrot.lane.b32.xlu1 %v2994_v23, %s2772_s29  ;;  %v2999_v25 = vld [vmem:[#allocation2 + $0x49] sm:$0xff]  ;;  %390 = vst.msk [vmem:[#allocation2 + $0xb1] sm:$0xff] %vm256_vm0, %v2563_v18  ;;  %v3153_v20 = vld [vmem:[#allocation2 + $0x18] sm:$0xff] }
  0x54   : > { %549 = vrot.lane.b32.xlu0 %v2999_v25, %s2772_s29  ;;  %380 = vst.msk [vmem:[#allocation2 + $0x39] sm:$0xff] %vm256_vm0, %v2543_v19  ;;  %v3008_v28 = vld [vmem:[#allocation2 + $0x21] sm:$0xff] }
  0x55   : > { %388 = vst.msk [vmem:[#allocation2 + $0x99] sm:$0xff] %vm256_vm0, %v2559_v21  ;;  %v3014_v31 = vld [vmem:[#allocation2 + $0x69] sm:$0xff]  ;;  %v3159_v22 = vld [vmem:[#allocation2 + $0x1a] sm:$0xff] }
  0x56   : > { %393 = vst.msk [vmem:[#allocation2 + $0xd9] sm:$0xff] %vm256_vm0, %v2570_v24  ;;  %v3027_v36 = vld [vmem:[#allocation2 + $0x51] sm:$0xff]  ;;  %v410_v18 = vld [vmem:[#allocation2 + $0x8] sm:$0xff]  ;;  %v3174_v30 = vld [vmem:[#allocation2 + $0x20] sm:$0xff] }
  0x57   : > { %383 = vst.msk [vmem:[#allocation2 + $0x61] sm:$0xff] %vm256_vm0, %v2550_v26  ;;  %v3031_v39 = vld [vmem:[#allocation2 + $0x91] sm:$0xff]  ;;  %v666_v21 = vld [vmem:[#allocation2 + $0x2] sm:$0xff] }
  0x58   : > { %v3010_v29 = vld [vmem:[#allocation2 + $0x31] sm:$0xff]  ;;  %391 = vst.msk [vmem:[#allocation2 + $0xc1] sm:$0xff] %vm256_vm0, %v2566_v27  ;;  %v3166_v26 = vld [vmem:[#allocation2 + $0x48] sm:$0xff] }
  0x59   : > { %545 = vrot.lane.b32.xlu2 %v3010_v29, %s2772_s29  ;;  %396 = vst.msk [vmem:[#allocation2 + $0xf9] sm:$0xff] %vm256_vm0, %v2575_v32  ;;  %v3044_v44 = vld [vmem:[#allocation2 + $0x79] sm:$0xff]  ;;  %v3148_v19 = vld [vmem:[#allocation2 + $0x30] sm:$0xff]  ;;  %v3178_v32 = vld [vmem:[#allocation2 + $0x22] sm:$0xff] }
  0x5a   : > { %386 = vst.msk [vmem:[#allocation2 + $0x81] sm:$0xff] %vm256_vm0, %v2555_v33  ;;  %v3047_v46 = vld [vmem:[#allocation2 + $0xb1] sm:$0xff] }
  0x5b   : > { %543 = vrot.lane.b32.xlu1 %v3008_v28, %s2772_s29  ;;  %394 = vst.msk [vmem:[#allocation2 + $0xe1] sm:$0xff] %vm256_vm0, %v2571_v34  ;;  %v3025_v35 = vld [vmem:[#allocation2 + $0x39] sm:$0xff]  ;;  %v3200_v45 = vld [vmem:[#allocation2 + $0x4a] sm:$0xff] }
  0x5c   : > { %555 = vrot.lane.b32.xlu0 %v3014_v31, %s2772_s29  ;;  %399 = vst.msk [vmem:[#allocation2 + $0x121] sm:$0xff] %vm256_vm0, %v2582_v40  ;;  %v3060_v51 = vld [vmem:[#allocation2 + $0x99] sm:$0xff]  ;;  %v3216_v52 = vld [vmem:[#allocation2 + $0x90] sm:$0xff] }
  0x5d   : > { %389 = vst.msk [vmem:[#allocation2 + $0xa9] sm:$0xff] %vm256_vm0, %v2562_v41  ;;  %v3064_v54 = vld [vmem:[#allocation2 + $0xd9] sm:$0xff] }
  0x5e   : > { %397 = vst.msk [vmem:[#allocation2 + $0x109] sm:$0xff] %vm256_vm0, %v2578_v42  ;;  %v3042_v43 = vld [vmem:[#allocation2 + $0x61] sm:$0xff]  ;;  %v3142_v17 = vld [vmem:[#allocation2 + $0x32] sm:$0xff] }
  0x5f   : > { %402 = vst.msk [vmem:[#allocation2 + $0x141] sm:$0xff] %vm256_vm0, %v2587_v47  ;;  %v3077_v59 = vld [vmem:[#allocation2 + $0xc1] sm:$0xff]  ;;  %v3161_v24 = vld [vmem:[#allocation2 + $0x52] sm:$0xff] }
  0x60   : > { %392 = vst.msk [vmem:[#allocation2 + $0xc9] sm:$0xff] %vm256_vm0, %v2567_v48  ;;  %v3079_v60 = vld [vmem:[#allocation2 + $0xf9] sm:$0xff]  ;;  %v3190_v40 = vld [vmem:[#allocation2 + $0x68] sm:$0xff]  ;;  %v3198_v42 = vld [vmem:[#allocation2 + $0x50] sm:$0xff] }
  0x61   : > { %547 = vrot.lane.b32.xlu2 %v3025_v35, %s2772_s29  ;;  %400 = vst.msk [vmem:[#allocation2 + $0x129] sm:$0xff] %vm256_vm0, %v2583_v49  ;;  %v3058_v50 = vld [vmem:[#allocation2 + $0x81] sm:$0xff]  ;;  %v3168_v27 = vld [vmem:[#allocation2 + $0x38] sm:$0xff] }
  0x62   : > { %405 = vst.msk [vmem:[#allocation2 + $0x169] sm:$0xff] %vm256_vm0, %v2594_v55  ;;  %v3091_v0 = vld [vmem:[#allocation2 + $0xe1] sm:$0xff]  ;;  %v3223_v55 = vld [vmem:[#allocation2 + $0x78] sm:$0xff] }
  0x63   : > { %551 = vrot.lane.b32.xlu1 %v3027_v36, %s2772_s29  ;;  %395 = vst.msk [vmem:[#allocation2 + $0xf1] sm:$0xff] %vm256_vm0, %v2574_v56  ;;  %v3093_v1 = vld [vmem:[#allocation2 + $0x121] sm:$0xff]  ;;  %v3227_v56 = vld [vmem:[#allocation2 + $0x6a] sm:$0xff] }
  0x64   : > { %561 = vrot.lane.b32.xlu0 %v3031_v39, %s2772_s29  ;;  %403 = vst.msk [vmem:[#allocation2 + $0x151] sm:$0xff] %vm256_vm0, %v2590_v57  ;;  %v3075_v58 = vld [vmem:[#allocation2 + $0xa9] sm:$0xff]  ;;  %v3182_v33 = vld [vmem:[#allocation2 + $0x3a] sm:$0xff] }
  0x65   : > { %398 = vst.msk [vmem:[#allocation2 + $0x111] sm:$0xff] %vm256_vm0, %v2579_v61  ;;  %v3104_v4 = vld [vmem:[#allocation2 + $0x109] sm:$0xff]  ;;  %v3184_v34 = vld [vmem:[#allocation2 + $0x7a] sm:$0xff] }
  0x66   : > { %406 = vst.msk [vmem:[#allocation2 + $0x171] sm:$0xff] %vm256_vm0, %v2595_v62  ;;  %v3106_v5 = vld [vmem:[#allocation2 + $0x141] sm:$0xff] }
  0x67   : > { %v3089_v63 = vld [vmem:[#allocation2 + $0xc9] sm:$0xff]  ;;  %401 = vst.msk [vmem:[#allocation2 + $0x139] sm:$0xff] %vm256_vm0, %v2586_v2  ;;  %v3195_v41 = vld [vmem:[#allocation2 + $0x60] sm:$0xff] }
  0x68   : > { %404 = vst.msk [vmem:[#allocation2 + $0x159] sm:$0xff] %vm256_vm0, %v2591_v6  ;;  %v3117_v8 = vld [vmem:[#allocation2 + $0x129] sm:$0xff]  ;;  %v3210_v48 = vld [vmem:[#allocation2 + $0x9a] sm:$0xff] }
  0x69   : > { %553 = vrot.lane.b32.xlu2 %v3042_v43, %s2772_s29  ;;  %v3119_v9 = vld [vmem:[#allocation2 + $0x169] sm:$0xff]  ;;  %441 = vst.msk [vmem:[#allocation3] sm:$0xff] %vm256_vm0, %v409_v14  ;;  %v3218_v53 = vld [vmem:[#allocation2 + $0x80] sm:$0xff]  ;;  %v3251_v14 = vld [vmem:[#allocation2 + $0x92] sm:$0xff] }
  0x6a   : > { %v3102_v3 = vld [vmem:[#allocation2 + $0xf1] sm:$0xff]  ;;  %4176 = vst [vmem:[#allocation8_spill] sm:$0xff] %v3142_v17  ;;  %v3206_v47 = vld [vmem:[#allocation2 + $0x62] sm:$0xff] }
  0x6b   : > { %557 = vrot.lane.b32.xlu1 %v3044_v44, %s2772_s29  ;;  %v3129_v11 = vld [vmem:[#allocation2 + $0x151] sm:$0xff]  ;;  %442 = vst.msk [vmem:[#allocation3 + $0x8] sm:$0xff] %vm256_vm0, %v410_v18  ;;  %v3233_v57 = vld [vmem:[#allocation2 + $0x82] sm:$0xff] }
  0x6c   : > { %567 = vrot.lane.b32.xlu0 %v3047_v46, %s2772_s29  ;;  %v3115_v7 = vld [vmem:[#allocation2 + $0x111] sm:$0xff]  ;;  %445 = vst.msk [vmem:[#allocation3 + $0x20] sm:$0xff] %vm256_vm0, %v3148_v19  ;;  %v3235_v61 = vld [vmem:[#allocation2 + $0xc2] sm:$0xff] }
  0x6d   : > { %v3140_v16 = vld [vmem:[#allocation2 + $0x171] sm:$0xff]  ;;  %443 = vst.msk [vmem:[#allocation3 + $0x10] sm:$0xff] %vm256_vm0, %v3153_v20 }
  0x6e   : > { %v3127_v10 = vld [vmem:[#allocation2 + $0x139] sm:$0xff]  ;;  %4175 = vst [vmem:[#allocation7_spill] sm:$0xff] %v3140_v16  ;;  %v3241_v2 = vld [vmem:[#allocation2 + $0xb0] sm:$0xff] }
  0x6f   : > { %v3138_v15 = vld [vmem:[#allocation2 + $0x159] sm:$0xff]  ;;  %4177 = vst [vmem:[#allocation9_spill] sm:$0xff] %v3159_v22 }
  0x70   : > { %4178 = vst [vmem:[#allocation10_spill] sm:$0xff] %v3161_v24  ;;  %v3253_v18 = vld [vmem:[#allocation2 + $0x98] sm:$0xff] }
  0x71   : > { %559 = vrot.lane.b32.xlu2 %v3058_v50, %s2772_s29  ;;  %447 = vst.msk [vmem:[#allocation3 + $0x30] sm:$0xff] %vm256_vm0, %v3166_v26 }
  0x72   : > { %446 = vst.msk [vmem:[#allocation3 + $0x28] sm:$0xff] %vm256_vm0, %v3168_v27 }
  0x73   : > { %563 = vrot.lane.b32.xlu1 %v3060_v51, %s2772_s29  ;;  %4179 = vst [vmem:[#allocation11_spill] sm:$0xff] %v3178_v32 }
  0x74   : > { %573 = vrot.lane.b32.xlu0 %v3064_v54, %s2772_s29  ;;  %444 = vst.msk [vmem:[#allocation3 + $0x18] sm:$0xff] %vm256_vm0, %v3174_v30 }
  0x75   : > { %4180 = vst [vmem:[#allocation12_spill] sm:$0xff] %v3182_v33 }
  0x76   : > { %4181 = vst [vmem:[#allocation13_spill] sm:$0xff] %v3184_v34 }
  0x77   : > { %4182 = vst [vmem:[#allocation14_spill] sm:$0xff] %v3200_v45 }
  0x78   : > { %450 = vst.msk [vmem:[#allocation3 + $0x48] sm:$0xff] %vm256_vm0, %v3190_v40 }
  0x79   : > { %565 = vrot.lane.b32.xlu2 %v3075_v58, %s2772_s29  ;;  %449 = vst.msk [vmem:[#allocation3 + $0x40] sm:$0xff] %vm256_vm0, %v3195_v41 }
  0x7a   : > { %4183 = vst [vmem:[#allocation15_spill] sm:$0xff] %v3206_v47 }
  0x7b   : > { %569 = vrot.lane.b32.xlu1 %v3077_v59, %s2772_s29  ;;  %448 = vst.msk [vmem:[#allocation3 + $0x38] sm:$0xff] %vm256_vm0, %v3198_v42 }
  0x7c   : > { %579 = vrot.lane.b32.xlu0 %v3079_v60, %s2772_s29  ;;  %4184 = vst [vmem:[#allocation16_spill] sm:$0xff] %v3210_v48 }
  0x7d   : > { %453 = vst.msk [vmem:[#allocation3 + $0x60] sm:$0xff] %vm256_vm0, %v3216_v52 }
  0x7e   : > { %4185 = vst [vmem:[#allocation17_spill] sm:$0xff] %v3227_v56 }
  0x7f   : > { %452 = vst.msk [vmem:[#allocation3 + $0x58] sm:$0xff] %vm256_vm0, %v3218_v53 }
  0x80   : > { %451 = vst.msk [vmem:[#allocation3 + $0x50] sm:$0xff] %vm256_vm0, %v3223_v55 }
  0x81   : > { %571 = vrot.lane.b32.xlu2 %v3089_v63, %s2772_s29  ;;  %4186 = vst [vmem:[#allocation18_spill] sm:$0xff] %v3233_v57 }
  0x82   : > { %4187 = vst [vmem:[#allocation19_spill] sm:$0xff] %v3235_v61 }
  0x83   : > { %575 = vrot.lane.b32.xlu1 %v3091_v0, %s2772_s29  ;;  %456 = vst.msk [vmem:[#allocation3 + $0x78] sm:$0xff] %vm256_vm0, %v3241_v2 }
  0x84   : > { %585 = vrot.lane.b32.xlu0 %v3093_v1, %s2772_s29  ;;  %4188 = vst [vmem:[#allocation20_spill] sm:$0xff] %v3251_v14 }
  0x85   : > { %454 = vst.msk [vmem:[#allocation3 + $0x68] sm:$0xff] %vm256_vm0, %v3253_v18 }
  0x89   : > { %577 = vrot.lane.b32.xlu2 %v3102_v3, %s2772_s29 }
  0x8b   : > { %581 = vrot.lane.b32.xlu1 %v3104_v4, %s2772_s29 }
  0x8c   : > { %591 = vrot.lane.b32.xlu0 %v3106_v5, %s2772_s29 }
  0x90   : > { %v538_v13 = vpop.permute.xlu0 %537 }
  0x91   : > { %583 = vrot.lane.b32.xlu2 %v3115_v7, %s2772_s29  ;;  %634 = vst.msk [vmem:[#allocation3] sm:$0xff] %vm633_vm2, %v538_v13 }
  0x93   : > { %587 = vrot.lane.b32.xlu1 %v3117_v8, %s2772_s29 }
  0x94   : > { %597 = vrot.lane.b32.xlu0 %v3119_v9, %s2772_s29 }
  0x99   : > { %589 = vrot.lane.b32.xlu2 %v3127_v10, %s2772_s29 }
  0x9b   : > { %593 = vrot.lane.b32.xlu1 %v3129_v11, %s2772_s29 }
  0x9c   : > { %732 = vrot.lane.b32.xlu0 %v667_v12, %s2773_s9  ;;  %v3248_v12 = vld [vmem:[#allocation2 + $0xa8] sm:$0xff] }
  0x9d   : > { %455 = vst.msk [vmem:[#allocation3 + $0x70] sm:$0xff] %vm256_vm0, %v3248_v12 }
  0xa1   : > { %595 = vrot.lane.b32.xlu2 %v3138_v15, %s2772_s29 }
  0xa3   : > { %599 = vrot.lane.b32.xlu1 %v3140_v16, %s2772_s29  ;;  %v3386_v16 = vld [vmem:[#allocation2 + $0x142] sm:$0xff] }
  0xa4   : > { %738 = vrot.lane.b32.xlu0 %v3142_v17, %s2773_s9  ;;  %v3359_v17 = vld [vmem:[#allocation2 + $0x122] sm:$0xff]  ;;  %4203 = vst [vmem:[#allocation35_spill] sm:$0xff] %v3386_v16 }
  0xa5   : > { %4200 = vst [vmem:[#allocation32_spill] sm:$0xff] %v3359_v17 }
  0xa9   : > { %730 = vrot.lane.b32.xlu2 %v666_v21, %s2773_s9  ;;  %v3256_v21 = vld [vmem:[#allocation2 + $0xaa] sm:$0xff] }
  0xaa   : > { %4189 = vst [vmem:[#allocation21_spill] sm:$0xff] %v3256_v21 }
  0xab   : > { %734 = vrot.lane.b32.xlu1 %v3159_v22, %s2773_s9  ;;  %v3364_v22 = vld [vmem:[#allocation2 + $0x13a] sm:$0xff] }
  0xac   : > { %744 = vrot.lane.b32.xlu0 %v3161_v24, %s2773_s9  ;;  %v3332_v24 = vld [vmem:[#allocation2 + $0xfa] sm:$0xff]  ;;  %4201 = vst [vmem:[#allocation33_spill] sm:$0xff] %v3364_v22 }
  0xad   : > { %4197 = vst [vmem:[#allocation29_spill] sm:$0xff] %v3332_v24 }
  0xb1   : > { %736 = vrot.lane.b32.xlu2 %v3178_v32, %s2773_s9  ;;  %v3391_v32 = vld [vmem:[#allocation2 + $0x15a] sm:$0xff] }
  0xb3   : > { %740 = vrot.lane.b32.xlu1 %v3182_v33, %s2773_s9  ;;  %v540_v37 = vpop.permute.xlu0 %539  ;;  %v546_v38 = vpop.permute.xlu2 %545  ;;  %v3337_v33 = vld [vmem:[#allocation2 + $0x112] sm:$0xff] }
  0xb4   : > { %750 = vrot.lane.b32.xlu0 %v3184_v34, %s2773_s9  ;;  %635 = vst.msk [vmem:[#allocation3 + $0x8] sm:$0xff] %vm633_vm2, %v540_v37  ;;  %v3260_v37 = vld [vmem:[#allocation2 + $0xe2] sm:$0xff]  ;;  %v3305_v34 = vld [vmem:[#allocation2 + $0xda] sm:$0xff] }
  0xb5   : > { %638 = vst.msk [vmem:[#allocation3 + $0x20] sm:$0xff] %vm633_vm2, %v546_v38 }
  0xb6   : > { %4190 = vst [vmem:[#allocation22_spill] sm:$0xff] %v3260_v37 }
  0xb7   : > { %4194 = vst [vmem:[#allocation26_spill] sm:$0xff] %v3305_v34 }
  0xb8   : > { %4198 = vst [vmem:[#allocation30_spill] sm:$0xff] %v3337_v33 }
  0xb9   : > { %742 = vrot.lane.b32.xlu2 %v3200_v45, %s2773_s9  ;;  %v3383_v45 = vld [vmem:[#allocation2 + $0x158] sm:$0xff] }
  0xba   : > { %470 = vst.msk [vmem:[#allocation3 + $0xe8] sm:$0xff] %vm256_vm0, %v3383_v45 }
  0xbb   : > { %746 = vrot.lane.b32.xlu1 %v3206_v47, %s2773_s9  ;;  %v548_v49 = vpop.permute.xlu2 %547  ;;  %v3310_v47 = vld [vmem:[#allocation2 + $0xf2] sm:$0xff] }
  0xbc   : > { %756 = vrot.lane.b32.xlu0 %v3210_v48, %s2773_s9  ;;  %639 = vst.msk [vmem:[#allocation3 + $0x28] sm:$0xff] %vm633_vm2, %v548_v49  ;;  %v3268_v49 = vld [vmem:[#allocation2 + $0xd8] sm:$0xff]  ;;  %v3283_v48 = vld [vmem:[#allocation2 + $0xca] sm:$0xff] }
  0xbd   : > { %459 = vst.msk [vmem:[#allocation3 + $0x90] sm:$0xff] %vm256_vm0, %v3268_v49 }
  0xbe   : > { %4192 = vst [vmem:[#allocation24_spill] sm:$0xff] %v3283_v48 }
  0xbf   : > { %4195 = vst [vmem:[#allocation27_spill] sm:$0xff] %v3310_v47 }
  0xc1   : > { %748 = vrot.lane.b32.xlu2 %v3227_v56, %s2773_s9  ;;  %v3356_v56 = vld [vmem:[#allocation2 + $0x138] sm:$0xff] }
  0xc2   : > { %467 = vst.msk [vmem:[#allocation3 + $0xd0] sm:$0xff] %vm256_vm0, %v3356_v56 }
  0xc3   : > { %752 = vrot.lane.b32.xlu1 %v3233_v57, %s2773_s9  ;;  %v554_v62 = vpop.permute.xlu2 %553  ;;  %v3302_v57 = vld [vmem:[#allocation2 + $0xf0] sm:$0xff] }
  0xc4   : > { %762 = vrot.lane.b32.xlu0 %v3235_v61, %s2773_s9  ;;  %642 = vst.msk [vmem:[#allocation3 + $0x40] sm:$0xff] %vm633_vm2, %v554_v62  ;;  %v3278_v61 = vld [vmem:[#allocation2 + $0xb2] sm:$0xff] }
  0xc5   : > { %v542_v6 = vpop.permute.xlu1 %541  ;;  %4191 = vst [vmem:[#allocation23_spill] sm:$0xff] %v3278_v61 }
  0xc6   : > { %636 = vst.msk [vmem:[#allocation3 + $0x10] sm:$0xff] %vm633_vm2, %v542_v6  ;;  %v550_v13 = vpop.permute.xlu0 %549  ;;  %v3275_v6 = vld [vmem:[#allocation2 + $0xc8] sm:$0xff] }
  0xc7   : > { %640 = vst.msk [vmem:[#allocation3 + $0x30] sm:$0xff] %vm633_vm2, %v550_v13 }
  0xc8   : > { %458 = vst.msk [vmem:[#allocation3 + $0x88] sm:$0xff] %vm256_vm0, %v3275_v6 }
  0xc9   : > { %754 = vrot.lane.b32.xlu2 %v3251_v14, %s2773_s9  ;;  %461 = vst.msk [vmem:[#allocation3 + $0xa0] sm:$0xff] %vm256_vm0, %v3302_v57  ;;  %v3329_v14 = vld [vmem:[#allocation2 + $0x110] sm:$0xff] }
  0xca   : > { %464 = vst.msk [vmem:[#allocation3 + $0xb8] sm:$0xff] %vm256_vm0, %v3329_v14 }
  0xcb   : > { %758 = vrot.lane.b32.xlu1 %v3256_v21, %s2773_s9  ;;  %v560_v38 = vpop.permute.xlu2 %559  ;;  %v3280_v21 = vld [vmem:[#allocation2 + $0xc0] sm:$0xff] }
  0xcc   : > { %768 = vrot.lane.b32.xlu0 %v3260_v37, %s2773_s9  ;;  %645 = vst.msk [vmem:[#allocation3 + $0x58] sm:$0xff] %vm633_vm2, %v560_v38  ;;  %v3287_v38 = vld [vmem:[#allocation2 + $0x10a] sm:$0xff]  ;;  %v3295_v37 = vld [vmem:[#allocation2 + $0xf8] sm:$0xff] }
  0xcd   : > { %v544_v62 = vpop.permute.xlu1 %543  ;;  %4193 = vst [vmem:[#allocation25_spill] sm:$0xff] %v3287_v38 }
  0xce   : > { %637 = vst.msk [vmem:[#allocation3 + $0x18] sm:$0xff] %vm633_vm2, %v544_v62  ;;  %v556_v13 = vpop.permute.xlu0 %555 }
  0xcf   : > { %643 = vst.msk [vmem:[#allocation3 + $0x48] sm:$0xff] %vm633_vm2, %v556_v13 }
  0xd0   : > { %457 = vst.msk [vmem:[#allocation3 + $0x80] sm:$0xff] %vm256_vm0, %v3280_v21 }
  0xd1   : > { %760 = vrot.lane.b32.xlu2 %v3278_v61, %s2773_s9  ;;  %462 = vst.msk [vmem:[#allocation3 + $0xa8] sm:$0xff] %vm256_vm0, %v3295_v37 }
  0xd3   : > { %764 = vrot.lane.b32.xlu1 %v3283_v48, %s2773_s9  ;;  %v566_v62 = vpop.permute.xlu2 %565  ;;  %v3307_v48 = vld [vmem:[#allocation2 + $0xe0] sm:$0xff] }
  0xd4   : > { %774 = vrot.lane.b32.xlu0 %v3287_v38, %s2773_s9  ;;  %648 = vst.msk [vmem:[#allocation3 + $0x70] sm:$0xff] %vm633_vm2, %v566_v62  ;;  %v3314_v62 = vld [vmem:[#allocation2 + $0x12a] sm:$0xff]  ;;  %v3322_v38 = vld [vmem:[#allocation2 + $0x120] sm:$0xff] }
  0xd5   : > { %v552_v13 = vpop.permute.xlu1 %551  ;;  %4196 = vst [vmem:[#allocation28_spill] sm:$0xff] %v3314_v62 }
  0xd6   : > { %641 = vst.msk [vmem:[#allocation3 + $0x38] sm:$0xff] %vm633_vm2, %v552_v13  ;;  %v562_v61 = vpop.permute.xlu0 %561 }
  0xd7   : > { %646 = vst.msk [vmem:[#allocation3 + $0x60] sm:$0xff] %vm633_vm2, %v562_v61 }
  0xd8   : > { %460 = vst.msk [vmem:[#allocation3 + $0x98] sm:$0xff] %vm256_vm0, %v3307_v48 }
  0xd9   : > { %766 = vrot.lane.b32.xlu2 %v3305_v34, %s2773_s9  ;;  %465 = vst.msk [vmem:[#allocation3 + $0xc0] sm:$0xff] %vm256_vm0, %v3322_v38 }
  0xdb   : > { %770 = vrot.lane.b32.xlu1 %v3310_v47, %s2773_s9  ;;  %v572_v13 = vpop.permute.xlu2 %571  ;;  %v3334_v47 = vld [vmem:[#allocation2 + $0x108] sm:$0xff] }
  0xdc   : > { %780 = vrot.lane.b32.xlu0 %v3314_v62, %s2773_s9  ;;  %651 = vst.msk [vmem:[#allocation3 + $0x88] sm:$0xff] %vm633_vm2, %v572_v13  ;;  %v3341_v13 = vld [vmem:[#allocation2 + $0x152] sm:$0xff]  ;;  %v3349_v62 = vld [vmem:[#allocation2 + $0x140] sm:$0xff] }
  0xdd   : > { %v558_v61 = vpop.permute.xlu1 %557  ;;  %4199 = vst [vmem:[#allocation31_spill] sm:$0xff] %v3341_v13 }
  0xde   : > { %644 = vst.msk [vmem:[#allocation3 + $0x50] sm:$0xff] %vm633_vm2, %v558_v61  ;;  %v568_v34 = vpop.permute.xlu0 %567 }
  0xdf   : > { %649 = vst.msk [vmem:[#allocation3 + $0x78] sm:$0xff] %vm633_vm2, %v568_v34 }
  0xe0   : > { %463 = vst.msk [vmem:[#allocation3 + $0xb0] sm:$0xff] %vm256_vm0, %v3334_v47 }
  0xe1   : > { %772 = vrot.lane.b32.xlu2 %v3332_v24, %s2773_s9  ;;  %468 = vst.msk [vmem:[#allocation3 + $0xd8] sm:$0xff] %vm256_vm0, %v3349_v62 }
  0xe3   : > { %776 = vrot.lane.b32.xlu1 %v3337_v33, %s2773_s9  ;;  %v578_v61 = vpop.permute.xlu2 %577  ;;  %v3361_v33 = vld [vmem:[#allocation2 + $0x128] sm:$0xff] }
  0xe4   : > { %786 = vrot.lane.b32.xlu0 %v3341_v13, %s2773_s9  ;;  %654 = vst.msk [vmem:[#allocation3 + $0xa0] sm:$0xff] %vm633_vm2, %v578_v61  ;;  %v3368_v61 = vld [vmem:[#allocation2 + $0x172] sm:$0xff]  ;;  %v3376_v13 = vld [vmem:[#allocation2 + $0x168] sm:$0xff] }
  0xe5   : > { %v564_v34 = vpop.permute.xlu1 %563  ;;  %4202 = vst [vmem:[#allocation34_spill] sm:$0xff] %v3368_v61 }
  0xe6   : > { %647 = vst.msk [vmem:[#allocation3 + $0x68] sm:$0xff] %vm633_vm2, %v564_v34  ;;  %v574_v24 = vpop.permute.xlu0 %573 }
  0xe7   : > { %652 = vst.msk [vmem:[#allocation3 + $0x90] sm:$0xff] %vm633_vm2, %v574_v24 }
  0xe8   : > { %466 = vst.msk [vmem:[#allocation3 + $0xc8] sm:$0xff] %vm256_vm0, %v3361_v33 }
  0xe9   : > { %778 = vrot.lane.b32.xlu2 %v3359_v17, %s2773_s9  ;;  %471 = vst.msk [vmem:[#allocation3 + $0xf0] sm:$0xff] %vm256_vm0, %v3376_v13 }
  0xeb   : > { %782 = vrot.lane.b32.xlu1 %v3364_v22, %s2773_s9  ;;  %v584_v34 = vpop.permute.xlu2 %583  ;;  %v3388_v22 = vld [vmem:[#allocation2 + $0x150] sm:$0xff] }
  0xec   : > { %792 = vrot.lane.b32.xlu0 %v3368_v61, %s2773_s9  ;;  %657 = vst.msk [vmem:[#allocation3 + $0xb8] sm:$0xff] %vm633_vm2, %v584_v34 }
  0xed   : > { %v570_v24 = vpop.permute.xlu1 %569  ;;  %469 = vst.msk [vmem:[#allocation3 + $0xe0] sm:$0xff] %vm256_vm0, %v3388_v22 }
  0xee   : > { %650 = vst.msk [vmem:[#allocation3 + $0x80] sm:$0xff] %vm633_vm2, %v570_v24  ;;  %v580_v17 = vpop.permute.xlu0 %579  ;;  %v3401_v24 = vld [vmem:[#allocation2 + $0x170] sm:$0xff] }
  0xef   : > { %655 = vst.msk [vmem:[#allocation3 + $0xa8] sm:$0xff] %vm633_vm2, %v580_v17 }
  0xf0   : > { %472 = vst.msk [vmem:[#allocation3 + $0xf8] sm:$0xff] %vm256_vm0, %v3401_v24 }
  0xf1   : > { %784 = vrot.lane.b32.xlu2 %v3386_v16, %s2773_s9  ;;  %v3409_v16 = vld [vmem:[#allocation2 + $0x16a] sm:$0xff] }
  0xf3   : > { %788 = vrot.lane.b32.xlu1 %v3391_v32, %s2773_s9  ;;  %v590_v34 = vpop.permute.xlu2 %589 }
  0xf4   : > { %927 = vrot.lane.b32.xlu0 %v3148_v19, %s2774_s10  ;;  %660 = vst.msk [vmem:[#allocation3 + $0xd0] sm:$0xff] %vm633_vm2, %v590_v34 }
  0xf5   : > { %v576_v17 = vpop.permute.xlu1 %575 }
  0xf6   : > { %653 = vst.msk [vmem:[#allocation3 + $0x98] sm:$0xff] %vm633_vm2, %v576_v17  ;;  %v586_v61 = vpop.permute.xlu0 %585 }
  0xf7   : > { %658 = vst.msk [vmem:[#allocation3 + $0xc0] sm:$0xff] %vm633_vm2, %v586_v61 }
  0xf9   : > { %790 = vrot.lane.b32.xlu2 %v3409_v16, %s2773_s9 }
  0xfb   : > { %923 = vrot.lane.b32.xlu1 %v3153_v20, %s2774_s10  ;;  %v596_v19 = vpop.permute.xlu2 %595 }
  0xfc   : > { %933 = vrot.lane.b32.xlu0 %v3198_v42, %s2774_s10  ;;  %663 = vst.msk [vmem:[#allocation3 + $0xe8] sm:$0xff] %vm633_vm2, %v596_v19 }
  0xfd   : > { %v582_v34 = vpop.permute.xlu1 %581 }
  0xfe   : > { %656 = vst.msk [vmem:[#allocation3 + $0xb0] sm:$0xff] %vm633_vm2, %v582_v34  ;;  %v592_v17 = vpop.permute.xlu0 %591 }
  0xff   : > { %661 = vst.msk [vmem:[#allocation3 + $0xd8] sm:$0xff] %vm633_vm2, %v592_v17 }
 0x101   : > { %925 = vrot.lane.b32.xlu2 %v3174_v30, %s2774_s10 }
 0x103   : > { %929 = vrot.lane.b32.xlu1 %v3168_v27, %s2774_s10  ;;  %v731_v20 = vpop.permute.xlu2 %730 }
 0x104   : > { %939 = vrot.lane.b32.xlu0 %v3223_v55, %s2774_s10  ;;  %827 = vst.msk [vmem:[#allocation3] sm:$0xff] %vm826_vm3, %v731_v20 }
 0x105   : > { %v588_v61 = vpop.permute.xlu1 %587 }
 0x106   : > { %659 = vst.msk [vmem:[#allocation3 + $0xc8] sm:$0xff] %vm633_vm2, %v588_v61  ;;  %v598_v19 = vpop.permute.xlu0 %597 }
 0x107   : > { %664 = vst.msk [vmem:[#allocation3 + $0xf0] sm:$0xff] %vm633_vm2, %v598_v19  ;;  %v2614_v19 = vld [vmem:[%s2958_s8 + $0x78] sm:$0xff]   ;;  %s237_s8 = sand.u32 1, %s2753_s16  }
 0x109   : > { %931 = vrot.lane.b32.xlu2 %v3166_v26, %s2774_s10 }
 0x10b   : > { %935 = vrot.lane.b32.xlu1 %v3195_v41, %s2774_s10  ;;  %v737_v30 = vpop.permute.xlu2 %736 }
 0x10c   : > { %945 = vrot.lane.b32.xlu0 %v3253_v18, %s2774_s10  ;;  %830 = vst.msk [vmem:[#allocation3 + $0x18] sm:$0xff] %vm826_vm3, %v737_v30  ;;  %v2598_v30 = vunpack.c.l.bf16 %v2614_v19 }
 0x10d   : > { %v594_v27 = vpop.permute.xlu1 %593 }
 0x10e   : > { %662 = vst.msk [vmem:[#allocation3 + $0xe0] sm:$0xff] %vm633_vm2, %v594_v27  ;;  %v733_v34 = vpop.permute.xlu0 %732 }
 0x10f   : > { %828 = vst.msk [vmem:[#allocation3 + $0x8] sm:$0xff] %vm826_vm3, %v733_v34 }
 0x110   : > { %407 = vst.msk [vmem:[#allocation2 + $0x181] sm:$0xff] %vm256_vm0, %v2598_v30 }
 0x111   : > { %937 = vrot.lane.b32.xlu2 %v3190_v40, %s2774_s10 }
 0x113   : > { %941 = vrot.lane.b32.xlu1 %v3218_v53, %s2774_s10  ;;  %v743_v26 = vpop.permute.xlu2 %742 }
 0x114   : > { %951 = vrot.lane.b32.xlu0 %v3280_v21, %s2774_s10  ;;  %833 = vst.msk [vmem:[#allocation3 + $0x30] sm:$0xff] %vm826_vm3, %v743_v26 }
 0x115   : > { %v600_v41 = vpop.permute.xlu1 %599 }
 0x116   : > { %665 = vst.msk [vmem:[#allocation3 + $0xf8] sm:$0xff] %vm633_vm2, %v600_v41  ;;  %v739_v17 = vpop.permute.xlu0 %738  ;;  %v2599_v41 = vunpack.c.h.bf16 %v2614_v19 }
 0x117   : > { %831 = vst.msk [vmem:[#allocation3 + $0x20] sm:$0xff] %vm826_vm3, %v739_v17 }
 0x118   : > { %408 = vst.msk [vmem:[#allocation2 + $0x189] sm:$0xff] %vm256_vm0, %v2599_v41  ;;  %v4208_v41 = vld [vmem:[#allocation8_spill] sm:$0xff] }
 0x119   : > { %943 = vrot.lane.b32.xlu2 %v3216_v52, %s2774_s10 }
 0x11b   : > { %947 = vrot.lane.b32.xlu1 %v3248_v12, %s2774_s10  ;;  %v749_v53 = vpop.permute.xlu2 %748 }
 0x11c   : > { %957 = vrot.lane.b32.xlu0 %v3307_v48, %s2774_s10  ;;  %836 = vst.msk [vmem:[#allocation3 + $0x48] sm:$0xff] %vm826_vm3, %v749_v53 }
 0x11d   : > { %v735_v20 = vpop.permute.xlu1 %734 }
 0x11e   : > { %829 = vst.msk [vmem:[#allocation3 + $0x10] sm:$0xff] %vm826_vm3, %v735_v20  ;;  %v745_v61 = vpop.permute.xlu0 %744  ;;  %v3505_v20 = vld [vmem:[#allocation2 + $0x180] sm:$0xff] }
 0x11f   : > { %834 = vst.msk [vmem:[#allocation3 + $0x38] sm:$0xff] %vm826_vm3, %v745_v61  ;;  %v3515_v19 = vld [vmem:[#allocation2 + $0x188] sm:$0xff] }
 0x121   : > { %949 = vrot.lane.b32.xlu2 %v3241_v2, %s2774_s10 }
 0x123   : > { %953 = vrot.lane.b32.xlu1 %v3275_v6, %s2774_s10  ;;  %v755_v12 = vpop.permute.xlu2 %754 }
 0x124   : > { %963 = vrot.lane.b32.xlu0 %v3334_v47, %s2774_s10  ;;  %839 = vst.msk [vmem:[#allocation3 + $0x60] sm:$0xff] %vm826_vm3, %v755_v12 }
 0x125   : > { %v741_v48 = vpop.permute.xlu1 %740 }
 0x126   : > { %832 = vst.msk [vmem:[#allocation3 + $0x28] sm:$0xff] %vm826_vm3, %v741_v48  ;;  %v751_v27 = vpop.permute.xlu0 %750  ;;  %v3590_v48 = vld [vmem:[#allocation2 + $0x181] sm:$0xff] }
 0x127   : > { %837 = vst.msk [vmem:[#allocation3 + $0x50] sm:$0xff] %vm826_vm3, %v751_v27 }
 0x129   : > { %955 = vrot.lane.b32.xlu2 %v3268_v49, %s2774_s10 }
 0x12b   : > { %959 = vrot.lane.b32.xlu1 %v3302_v57, %s2774_s10  ;;  %v761_v6 = vpop.permute.xlu2 %760 }
 0x12c   : > { %969 = vrot.lane.b32.xlu0 %v3361_v33, %s2774_s10  ;;  %842 = vst.msk [vmem:[#allocation3 + $0x78] sm:$0xff] %vm826_vm3, %v761_v6 }
 0x12d   : > { %v747_v47 = vpop.permute.xlu1 %746 }
 0x12e   : > { %835 = vst.msk [vmem:[#allocation3 + $0x40] sm:$0xff] %vm826_vm3, %v747_v47  ;;  %v757_v34 = vpop.permute.xlu0 %756  ;;  %v3610_v47 = vld [vmem:[#allocation2 + $0x189] sm:$0xff] }
 0x12f   : > { %840 = vst.msk [vmem:[#allocation3 + $0x68] sm:$0xff] %vm826_vm3, %v757_v34  ;;  %v4206_v34 = vld [vmem:[#allocation14_spill] sm:$0xff] }
 0x131   : > { %961 = vrot.lane.b32.xlu2 %v3295_v37, %s2774_s10 }
 0x133   : > { %965 = vrot.lane.b32.xlu1 %v3329_v14, %s2774_s10  ;;  %v767_v49 = vpop.permute.xlu2 %766 }
 0x134   : > { %975 = vrot.lane.b32.xlu0 %v3388_v22, %s2774_s10  ;;  %845 = vst.msk [vmem:[#allocation3 + $0x90] sm:$0xff] %vm826_vm3, %v767_v49 }
 0x135   : > { %v753_v33 = vpop.permute.xlu1 %752 }
 0x136   : > { %838 = vst.msk [vmem:[#allocation3 + $0x58] sm:$0xff] %vm826_vm3, %v753_v33  ;;  %v763_v26 = vpop.permute.xlu0 %762 }
 0x137   : > { %843 = vst.msk [vmem:[#allocation3 + $0x80] sm:$0xff] %vm826_vm3, %v763_v26  ;;  %v4207_v26 = vld [vmem:[#allocation9_spill] sm:$0xff] }
 0x139   : > { %967 = vrot.lane.b32.xlu2 %v3322_v38, %s2774_s10 }
 0x13b   : > { %971 = vrot.lane.b32.xlu1 %v3356_v56, %s2774_s10  ;;  %v773_v14 = vpop.permute.xlu2 %772 }
 0x13c   : > { %981 = vrot.lane.b32.xlu0 %v3401_v24, %s2774_s10  ;;  %848 = vst.msk [vmem:[#allocation3 + $0xa8] sm:$0xff] %vm826_vm3, %v773_v14 }
 0x13d   : > { %v759_v17 = vpop.permute.xlu1 %758 }
 0x13e   : > { %841 = vst.msk [vmem:[#allocation3 + $0x70] sm:$0xff] %vm826_vm3, %v759_v17  ;;  %v769_v53 = vpop.permute.xlu0 %768  ;;  %v4209_v17 = vld [vmem:[#allocation17_spill] sm:$0xff] }
 0x13f   : > { %846 = vst.msk [vmem:[#allocation3 + $0x98] sm:$0xff] %vm826_vm3, %v769_v53 }
 0x141   : > { %973 = vrot.lane.b32.xlu2 %v3349_v62, %s2774_s10 }
 0x143   : > { %977 = vrot.lane.b32.xlu1 %v3383_v45, %s2774_s10  ;;  %v779_v56 = vpop.permute.xlu2 %778 }
 0x144   : > { %1116 = vrot.lane.b32.xlu0 %v2994_v23, %s2775_s11  ;;  %851 = vst.msk [vmem:[#allocation3 + $0xc0] sm:$0xff] %vm826_vm3, %v779_v56 }
 0x145   : > { %v765_v38 = vpop.permute.xlu1 %764 }
 0x146   : > { %844 = vst.msk [vmem:[#allocation3 + $0x88] sm:$0xff] %vm826_vm3, %v765_v38  ;;  %v775_v24 = vpop.permute.xlu0 %774  ;;  %v4210_v38 = vld [vmem:[#allocation12_spill] sm:$0xff] }
 0x147   : > { %849 = vst.msk [vmem:[#allocation3 + $0xb0] sm:$0xff] %vm826_vm3, %v775_v24  ;;  %v4211_v24 = vld [vmem:[#allocation10_spill] sm:$0xff] }
 0x149   : > { %979 = vrot.lane.b32.xlu2 %v3376_v13, %s2774_s10 }
 0x14b   : > { %983 = vrot.lane.b32.xlu1 %v3505_v20, %s2774_s10  ;;  %v785_v62 = vpop.permute.xlu2 %784 }
 0x14c   : > { %1122 = vrot.lane.b32.xlu0 %v3025_v35, %s2775_s11  ;;  %854 = vst.msk [vmem:[#allocation3 + $0xd8] sm:$0xff] %vm826_vm3, %v785_v62 }
 0x14d   : > { %v771_v23 = vpop.permute.xlu1 %770 }
 0x14e   : > { %847 = vst.msk [vmem:[#allocation3 + $0xa0] sm:$0xff] %vm826_vm3, %v771_v23  ;;  %v781_v61 = vpop.permute.xlu0 %780  ;;  %v4212_v23 = vld [vmem:[#allocation20_spill] sm:$0xff] }
 0x14f   : > { %852 = vst.msk [vmem:[#allocation3 + $0xc8] sm:$0xff] %vm826_vm3, %v781_v61 }
 0x151   : > { %985 = vrot.lane.b32.xlu2 %v3515_v19, %s2774_s10  ;;  %s2711_s10 = scalar_lea.hbm %s4143_s4, 512 }
 0x153   : > { %1118 = vrot.lane.b32.xlu1 %v3008_v28, %s2775_s11  ;;  %v791_v13 = vpop.permute.xlu2 %790 }
 0x154   : > { %1128 = vrot.lane.b32.xlu0 %v3042_v43, %s2775_s11  ;;  %857 = vst.msk [vmem:[#allocation3 + $0xf0] sm:$0xff] %vm826_vm3, %v791_v13 }
 0x155   : > { %v777_v35 = vpop.permute.xlu1 %776 }
 0x156   : > { %850 = vst.msk [vmem:[#allocation3 + $0xb8] sm:$0xff] %vm826_vm3, %v777_v35  ;;  %v787_v30 = vpop.permute.xlu0 %786  ;;  %v4213_v35 = vld [vmem:[#allocation15_spill] sm:$0xff] }
 0x157   : > { %855 = vst.msk [vmem:[#allocation3 + $0xe0] sm:$0xff] %vm826_vm3, %v787_v30  ;;  %v4214_v30 = vld [vmem:[#allocation13_spill] sm:$0xff] }
 0x159   : > { %1120 = vrot.lane.b32.xlu2 %v3010_v29, %s2775_s11 }
 0x15b   : > { %1124 = vrot.lane.b32.xlu1 %v2999_v25, %s2775_s11  ;;  %v926_v28 = vpop.permute.xlu2 %925 }
 0x15c   : > { %1134 = vrot.lane.b32.xlu0 %v3058_v50, %s2775_s11  ;;  %1021 = vst.msk [vmem:[#allocation3 + $0x8] sm:$0xff] %vm1019_vm4, %v926_v28 }
 0x15d   : > { %v783_v43 = vpop.permute.xlu1 %782 }
 0x15e   : > { %853 = vst.msk [vmem:[#allocation3 + $0xd0] sm:$0xff] %vm826_vm3, %v783_v43  ;;  %v793_v12 = vpop.permute.xlu0 %792  ;;  %v4215_v43 = vld [vmem:[#allocation23_spill] sm:$0xff] }
 0x15f   : > { %858 = vst.msk [vmem:[#allocation3 + $0xf8] sm:$0xff] %vm826_vm3, %v793_v12 }
 0x161   : > { %1126 = vrot.lane.b32.xlu2 %v3027_v36, %s2775_s11 }
 0x163   : > { %1130 = vrot.lane.b32.xlu1 %v3014_v31, %s2775_s11  ;;  %v932_v29 = vpop.permute.xlu2 %931 }
 0x164   : > { %1140 = vrot.lane.b32.xlu0 %v3075_v58, %s2775_s11  ;;  %1024 = vst.msk [vmem:[#allocation3 + $0x20] sm:$0xff] %vm1019_vm4, %v932_v29 }
 0x165   : > { %v789_v25 = vpop.permute.xlu1 %788 }
 0x166   : > { %856 = vst.msk [vmem:[#allocation3 + $0xe8] sm:$0xff] %vm826_vm3, %v789_v25  ;;  %v928_v50 = vpop.permute.xlu0 %927  ;;  %v4216_v25 = vld [vmem:[#allocation18_spill] sm:$0xff] }
 0x167   : > { %1022 = vst.msk [vmem:[#allocation3 + $0x10] sm:$0xff] %vm1019_vm4, %v928_v50  ;;  %v4217_v50 = vld [vmem:[#allocation16_spill] sm:$0xff] }
 0x169   : > { %1132 = vrot.lane.b32.xlu2 %v3044_v44, %s2775_s11 }
 0x16b   : > { %1136 = vrot.lane.b32.xlu1 %v3031_v39, %s2775_s11  ;;  %v938_v36 = vpop.permute.xlu2 %937 }
 0x16c   : > { %1146 = vrot.lane.b32.xlu0 %v3089_v63, %s2775_s11  ;;  %1027 = vst.msk [vmem:[#allocation3 + $0x38] sm:$0xff] %vm1019_vm4, %v938_v36 }
 0x16d   : > { %v924_v31 = vpop.permute.xlu1 %923 }
 0x16e   : > { %1020 = vst.msk [vmem:[#allocation3] sm:$0xff] %vm1019_vm4, %v924_v31  ;;  %v934_v58 = vpop.permute.xlu0 %933  ;;  %v4218_v31 = vld [vmem:[#allocation26_spill] sm:$0xff] }
 0x16f   : > { %1025 = vst.msk [vmem:[#allocation3 + $0x28] sm:$0xff] %vm1019_vm4, %v934_v58 }
 0x171   : > { %1138 = vrot.lane.b32.xlu2 %v3060_v51, %s2775_s11 }
 0x173   : > { %1142 = vrot.lane.b32.xlu1 %v3047_v46, %s2775_s11  ;;  %v944_v44 = vpop.permute.xlu2 %943 }
 0x174   : > { %1152 = vrot.lane.b32.xlu0 %v3102_v3, %s2775_s11  ;;  %1030 = vst.msk [vmem:[#allocation3 + $0x50] sm:$0xff] %vm1019_vm4, %v944_v44 }
 0x175   : > { %v930_v39 = vpop.permute.xlu1 %929 }
 0x176   : > { %1023 = vst.msk [vmem:[#allocation3 + $0x18] sm:$0xff] %vm1019_vm4, %v930_v39  ;;  %v940_v63 = vpop.permute.xlu0 %939  ;;  %v4219_v39 = vld [vmem:[#allocation21_spill] sm:$0xff] }
 0x177   : > { %1028 = vst.msk [vmem:[#allocation3 + $0x40] sm:$0xff] %vm1019_vm4, %v940_v63  ;;  %v4220_v63 = vld [vmem:[#allocation19_spill] sm:$0xff] }
 0x179   : > { %1144 = vrot.lane.b32.xlu2 %v3077_v59, %s2775_s11 }
 0x17b   : > { %1148 = vrot.lane.b32.xlu1 %v3064_v54, %s2775_s11  ;;  %v950_v51 = vpop.permute.xlu2 %949 }
 0x17c   : > { %1158 = vrot.lane.b32.xlu0 %v3115_v7, %s2775_s11  ;;  %1033 = vst.msk [vmem:[#allocation3 + $0x68] sm:$0xff] %vm1019_vm4, %v950_v51 }
 0x17d   : > { %v936_v46 = vpop.permute.xlu1 %935 }
 0x17e   : > { %1026 = vst.msk [vmem:[#allocation3 + $0x30] sm:$0xff] %vm1019_vm4, %v936_v46  ;;  %v946_v3 = vpop.permute.xlu0 %945  ;;  %v4221_v46 = vld [vmem:[#allocation29_spill] sm:$0xff] }
 0x17f   : > { %1031 = vst.msk [vmem:[#allocation3 + $0x58] sm:$0xff] %vm1019_vm4, %v946_v3 }
 0x181   : > { %1150 = vrot.lane.b32.xlu2 %v3091_v0, %s2775_s11 }
 0x183   : > { %1154 = vrot.lane.b32.xlu1 %v3079_v60, %s2775_s11  ;;  %v956_v59 = vpop.permute.xlu2 %955 }
 0x184   : > { %1164 = vrot.lane.b32.xlu0 %v3127_v10, %s2775_s11  ;;  %1036 = vst.msk [vmem:[#allocation3 + $0x80] sm:$0xff] %vm1019_vm4, %v956_v59 }
 0x185   : > { %v942_v54 = vpop.permute.xlu1 %941 }
 0x186   : > { %1029 = vst.msk [vmem:[#allocation3 + $0x48] sm:$0xff] %vm1019_vm4, %v942_v54  ;;  %v952_v7 = vpop.permute.xlu0 %951  ;;  %v4222_v54 = vld [vmem:[#allocation24_spill] sm:$0xff] }
 0x187   : > { %1034 = vst.msk [vmem:[#allocation3 + $0x70] sm:$0xff] %vm1019_vm4, %v952_v7  ;;  %v4223_v7 = vld [vmem:[#allocation22_spill] sm:$0xff] }
 0x189   : > { %1156 = vrot.lane.b32.xlu2 %v3104_v4, %s2775_s11 }
 0x18b   : > { %1160 = vrot.lane.b32.xlu1 %v3093_v1, %s2775_s11  ;;  %v962_v0 = vpop.permute.xlu2 %961 }
 0x18c   : > { %1170 = vrot.lane.b32.xlu0 %v3138_v15, %s2775_s11  ;;  %1039 = vst.msk [vmem:[#allocation3 + $0x98] sm:$0xff] %vm1019_vm4, %v962_v0 }
 0x18d   : > { %v948_v60 = vpop.permute.xlu1 %947 }
 0x18e   : > { %1032 = vst.msk [vmem:[#allocation3 + $0x60] sm:$0xff] %vm1019_vm4, %v948_v60  ;;  %v958_v10 = vpop.permute.xlu0 %957  ;;  %v4224_v60 = vld [vmem:[#allocation32_spill] sm:$0xff] }
 0x18f   : > { %1037 = vst.msk [vmem:[#allocation3 + $0x88] sm:$0xff] %vm1019_vm4, %v958_v10 }
 0x191   : > { %1162 = vrot.lane.b32.xlu2 %v3117_v8, %s2775_s11 }
 0x193   : > { %1166 = vrot.lane.b32.xlu1 %v3106_v5, %s2775_s11  ;;  %v968_v1 = vpop.permute.xlu2 %967  ;;  %v4204_v5 = vld [vmem:[#allocation11_spill] sm:$0xff] }
 0x194   : > { %1176 = vrot.lane.b32.xlu0 %v3590_v48, %s2775_s11  ;;  %1042 = vst.msk [vmem:[#allocation3 + $0xb0] sm:$0xff] %vm1019_vm4, %v968_v1 }
 0x195   : > { %v954_v4 = vpop.permute.xlu1 %953 }
 0x196   : > { %1035 = vst.msk [vmem:[#allocation3 + $0x78] sm:$0xff] %vm1019_vm4, %v954_v4  ;;  %v964_v15 = vpop.permute.xlu0 %963  ;;  %v4225_v4 = vld [vmem:[#allocation27_spill] sm:$0xff] }
 0x197   : > { %1040 = vst.msk [vmem:[#allocation3 + $0xa0] sm:$0xff] %vm1019_vm4, %v964_v15  ;;  %v4226_v15 = vld [vmem:[#allocation25_spill] sm:$0xff] }
 0x199   : > { %1168 = vrot.lane.b32.xlu2 %v3129_v11, %s2775_s11  ;;  %v4205_v11 = vld [vmem:[#allocation7_spill] sm:$0xff] }
 0x19b   : > { %1172 = vrot.lane.b32.xlu1 %v3119_v9, %s2775_s11  ;;  %v974_v8 = vpop.permute.xlu2 %973 }
 0x19c   : > { %1311 = vrot.lane.b32.xlu0 %v4204_v5, %s2776_s12  ;;  %1045 = vst.msk [vmem:[#allocation3 + $0xc8] sm:$0xff] %vm1019_vm4, %v974_v8  ;;  %v4227_v5 = vld [vmem:[#allocation35_spill] sm:$0xff] }
 0x19d   : > { %v960_v27 = vpop.permute.xlu1 %959 }
 0x19e   : > { %1038 = vst.msk [vmem:[#allocation3 + $0x90] sm:$0xff] %vm1019_vm4, %v960_v27  ;;  %v970_v6 = vpop.permute.xlu0 %969 }
 0x19f   : > { %1043 = vst.msk [vmem:[#allocation3 + $0xb8] sm:$0xff] %vm1019_vm4, %v970_v6 }
 0x1a1   : > { %1174 = vrot.lane.b32.xlu2 %v4205_v11, %s2775_s11  ;;  %v4228_v11 = vld [vmem:[#allocation30_spill] sm:$0xff] }
 0x1a3   : > { %1178 = vrot.lane.b32.xlu1 %v3610_v47, %s2775_s11  ;;  %v980_v9 = vpop.permute.xlu2 %979 }
 0x1a4   : > { %1317 = vrot.lane.b32.xlu0 %v4206_v34, %s2776_s12  ;;  %1048 = vst.msk [vmem:[#allocation3 + $0xe0] sm:$0xff] %vm1019_vm4, %v980_v9  ;;  %v4229_v9 = vld [vmem:[#allocation28_spill] sm:$0xff] }
 0x1a5   : > { %v966_v49 = vpop.permute.xlu1 %965 }
 0x1a6   : > { %1041 = vst.msk [vmem:[#allocation3 + $0xa8] sm:$0xff] %vm1019_vm4, %v966_v49  ;;  %v976_v33 = vpop.permute.xlu0 %975 }
 0x1a7   : > { %1046 = vst.msk [vmem:[#allocation3 + $0xd0] sm:$0xff] %vm1019_vm4, %v976_v33 }
 0x1a9   : > { %1309 = vrot.lane.b32.xlu2 %v4207_v26, %s2776_s12  ;;  %v3693_v26 = vld [vmem:[#allocation2 + $0x18a] sm:$0xff] }
 0x1ab   : > { %1313 = vrot.lane.b32.xlu1 %v4208_v41, %s2776_s12  ;;  %v986_v14 = vpop.permute.xlu2 %985  ;;  %v4230_v41 = vld [vmem:[#allocation33_spill] sm:$0xff] }
 0x1ac   : > { %1323 = vrot.lane.b32.xlu0 %v4209_v17, %s2776_s12  ;;  %1051 = vst.msk [vmem:[#allocation3 + $0xf8] sm:$0xff] %vm1019_vm4, %v986_v14  ;;  %v4231_v14 = vld [vmem:[#allocation31_spill] sm:$0xff] }
 0x1ad   : > { %v972_v53 = vpop.permute.xlu1 %971 }
 0x1ae   : > { %1044 = vst.msk [vmem:[#allocation3 + $0xc0] sm:$0xff] %vm1019_vm4, %v972_v53  ;;  %v982_v56 = vpop.permute.xlu0 %981 }
 0x1af   : > { %1049 = vst.msk [vmem:[#allocation3 + $0xe8] sm:$0xff] %vm1019_vm4, %v982_v56  ;;  %v1441_v56 = vld [vmem:[#allocation2 + $0x48] sm:$0xff] }
 0x1b1   : > { %1315 = vrot.lane.b32.xlu2 %v4210_v38, %s2776_s12  ;;  %v4232_v38 = vld [vmem:[#allocation34_spill] sm:$0xff] }
 0x1b3   : > { %1319 = vrot.lane.b32.xlu1 %v4211_v24, %s2776_s12  ;;  %v1121_v62 = vpop.permute.xlu2 %1120 }
 0x1b4   : > { %1329 = vrot.lane.b32.xlu0 %v4212_v23, %s2776_s12  ;;  %1215 = vst.msk [vmem:[#allocation3 + $0x10] sm:$0xff] %vm1212_vm5, %v1121_v62 }
 0x1b5   : > { %v978_v61 = vpop.permute.xlu1 %977 }
 0x1b6   : > { %1047 = vst.msk [vmem:[#allocation3 + $0xd8] sm:$0xff] %vm1019_vm4, %v978_v61  ;;  %v1117_v13 = vpop.permute.xlu0 %1116  ;;  %v3711_v61 = vld [vmem:[#allocation2 + $0x182] sm:$0xff] }
 0x1b7   : > { %1213 = vst.msk [vmem:[#allocation3] sm:$0xff] %vm1212_vm5, %v1117_v13  ;;  %v1439_v13 = vld [vmem:[#allocation2 + $0x30] sm:$0xff] }
 0x1b9   : > { %1321 = vrot.lane.b32.xlu2 %v4213_v35, %s2776_s12 }
 0x1bb   : > { %1325 = vrot.lane.b32.xlu1 %v4214_v30, %s2776_s12  ;;  %v1127_v28 = vpop.permute.xlu2 %1126 }
 0x1bc   : > { %1335 = vrot.lane.b32.xlu0 %v4215_v43, %s2776_s12  ;;  %1218 = vst.msk [vmem:[#allocation3 + $0x28] sm:$0xff] %vm1212_vm5, %v1127_v28  ;;  %v1440_v28 = vld [vmem:[#allocation2 + $0x38] sm:$0xff] }
 0x1bd   : > { %v984_v12 = vpop.permute.xlu1 %983 }
 0x1be   : > { %1050 = vst.msk [vmem:[#allocation3 + $0xf0] sm:$0xff] %vm1019_vm4, %v984_v12  ;;  %v1123_v29 = vpop.permute.xlu0 %1122 }
 0x1bf   : > { %1216 = vst.msk [vmem:[#allocation3 + $0x18] sm:$0xff] %vm1212_vm5, %v1123_v29  ;;  %v1443_v29 = vld [vmem:[#allocation2 + $0x60] sm:$0xff] }
 0x1c1   : > { %1327 = vrot.lane.b32.xlu2 %v4216_v25, %s2776_s12 }
 0x1c3   : > { %1331 = vrot.lane.b32.xlu1 %v4217_v50, %s2776_s12  ;;  %v1133_v36 = vpop.permute.xlu2 %1132  ;;  %v1446_v50 = vld [vmem:[#allocation2 + $0x80] sm:$0xff] }
 0x1c4   : > { %1341 = vrot.lane.b32.xlu0 %v4218_v31, %s2776_s12  ;;  %1221 = vst.msk [vmem:[#allocation3 + $0x40] sm:$0xff] %vm1212_vm5, %v1133_v36  ;;  %v1449_v31 = vld [vmem:[#allocation2 + $0xa8] sm:$0xff] }
 0x1c5   : > { %v1119_v58 = vpop.permute.xlu1 %1118 }
 0x1c6   : > { %1214 = vst.msk [vmem:[#allocation3 + $0x8] sm:$0xff] %vm1212_vm5, %v1119_v58  ;;  %v1129_v44 = vpop.permute.xlu0 %1128 }
 0x1c7   : > { %1219 = vst.msk [vmem:[#allocation3 + $0x30] sm:$0xff] %vm1212_vm5, %v1129_v44  ;;  %v1452_v44 = vld [vmem:[#allocation2 + $0xc8] sm:$0xff] }
 0x1c9   : > { %1333 = vrot.lane.b32.xlu2 %v4219_v39, %s2776_s12  ;;  %v1656_v39 = vld [vmem:[#allocation2 + $0x151] sm:$0xff] }
 0x1cb   : > { %1337 = vrot.lane.b32.xlu1 %v4220_v63, %s2776_s12  ;;  %v1139_v51 = vpop.permute.xlu2 %1138 }
 0x1cc   : > { %1347 = vrot.lane.b32.xlu0 %v4221_v46, %s2776_s12  ;;  %1224 = vst.msk [vmem:[#allocation3 + $0x58] sm:$0xff] %vm1212_vm5, %v1139_v51  ;;  %v1648_v51 = vld [vmem:[#allocation2 + $0xf1] sm:$0xff]  ;;  %v1842_v46 = vld [vmem:[#allocation2 + $0xfa] sm:$0xff] }
 0x1cd   : > { %v1125_v3 = vpop.permute.xlu1 %1124 }
 0x1ce   : > { %1217 = vst.msk [vmem:[#allocation3 + $0x20] sm:$0xff] %vm1212_vm5, %v1125_v3  ;;  %v1135_v59 = vpop.permute.xlu0 %1134 }
 0x1cf   : > { %1222 = vst.msk [vmem:[#allocation3 + $0x48] sm:$0xff] %vm1212_vm5, %v1135_v59 }
 0x1d1   : > { %1339 = vrot.lane.b32.xlu2 %v4222_v54, %s2776_s12  ;;  %v1649_v54 = vld [vmem:[#allocation2 + $0xf9] sm:$0xff] }
 0x1d3   : > { %1343 = vrot.lane.b32.xlu1 %v4223_v7, %s2776_s12  ;;  %v1145_v0 = vpop.permute.xlu2 %1144  ;;  %v1657_v7 = vld [vmem:[#allocation2 + $0x159] sm:$0xff] }
 0x1d4   : > { %1353 = vrot.lane.b32.xlu0 %v4224_v60, %s2776_s12  ;;  %1227 = vst.msk [vmem:[#allocation3 + $0x70] sm:$0xff] %vm1212_vm5, %v1145_v0  ;;  %v1632_v0 = vld [vmem:[#allocation2 + $0x31] sm:$0xff] }
 0x1d5   : > { %v1131_v10 = vpop.permute.xlu1 %1130 }
 0x1d6   : > { %1220 = vst.msk [vmem:[#allocation3 + $0x38] sm:$0xff] %vm1212_vm5, %v1131_v10  ;;  %v1141_v1 = vpop.permute.xlu0 %1140 }
 0x1d7   : > { %1225 = vst.msk [vmem:[#allocation3 + $0x60] sm:$0xff] %vm1212_vm5, %v1141_v1  ;;  %v1841_v1 = vld [vmem:[#allocation2 + $0xf2] sm:$0xff] }
 0x1d9   : > { %1345 = vrot.lane.b32.xlu2 %v4225_v4, %s2776_s12  ;;  %v1849_v4 = vld [vmem:[#allocation2 + $0x152] sm:$0xff] }
 0x1db   : > { %1349 = vrot.lane.b32.xlu1 %v4226_v15, %s2776_s12  ;;  %v1151_v8 = vpop.permute.xlu2 %1150  ;;  %v1641_v15 = vld [vmem:[#allocation2 + $0x99] sm:$0xff] }
 0x1dc   : > { %1359 = vrot.lane.b32.xlu0 %v4227_v5, %s2776_s12  ;;  %1230 = vst.msk [vmem:[#allocation3 + $0x88] sm:$0xff] %vm1212_vm5, %v1151_v8 }
 0x1dd   : > { %v1137_v27 = vpop.permute.xlu1 %1136 }
 0x1de   : > { %1223 = vst.msk [vmem:[#allocation3 + $0x50] sm:$0xff] %vm1212_vm5, %v1137_v27  ;;  %v1147_v6 = vpop.permute.xlu0 %1146 }
 0x1df   : > { %1228 = vst.msk [vmem:[#allocation3 + $0x78] sm:$0xff] %vm1212_vm5, %v1147_v6  ;;  %v1850_v6 = vld [vmem:[#allocation2 + $0x15a] sm:$0xff] }
 0x1e1   : > { %1351 = vrot.lane.b32.xlu2 %v4228_v11, %s2776_s12  ;;  %v1633_v11 = vld [vmem:[#allocation2 + $0x39] sm:$0xff] }
 0x1e3   : > { %1355 = vrot.lane.b32.xlu1 %v4229_v9, %s2776_s12  ;;  %v1157_v34 = vpop.permute.xlu2 %1156  ;;  %v1833_v9 = vld [vmem:[#allocation2 + $0x92] sm:$0xff] }
 0x1e4   : > { %1365 = vrot.lane.b32.xlu0 %v3409_v16, %s2776_s12  ;;  %1233 = vst.msk [vmem:[#allocation3 + $0xa0] sm:$0xff] %vm1212_vm5, %v1157_v34 }
 0x1e5   : > { %v1143_v49 = vpop.permute.xlu1 %1142 }
 0x1e6   : > { %1226 = vst.msk [vmem:[#allocation3 + $0x68] sm:$0xff] %vm1212_vm5, %v1143_v49  ;;  %v1153_v33 = vpop.permute.xlu0 %1152 }
 0x1e7   : > { %1231 = vst.msk [vmem:[#allocation3 + $0x90] sm:$0xff] %vm1212_vm5, %v1153_v33 }
 0x1e9   : > { %1357 = vrot.lane.b32.xlu2 %v4230_v41, %s2776_s12  ;;  %v1640_v41 = vld [vmem:[#allocation2 + $0x91] sm:$0xff] }
 0x1eb   : > { %1361 = vrot.lane.b32.xlu1 %v4231_v14, %s2776_s12  ;;  %v1163_v17 = vpop.permute.xlu2 %1162  ;;  %v1825_v14 = vld [vmem:[#allocation2 + $0x32] sm:$0xff] }
 0x1ec   : > { %1371 = vrot.lane.b32.xlu0 %v3693_v26, %s2776_s12  ;;  %1236 = vst.msk [vmem:[#allocation3 + $0xb8] sm:$0xff] %vm1212_vm5, %v1163_v17  ;;  %v1458_v17 = vld [vmem:[#allocation2 + $0x110] sm:$0xff] }
 0x1ed   : > { %v1149_v16 = vpop.permute.xlu1 %1148 }
 0x1ee   : > { %1229 = vst.msk [vmem:[#allocation3 + $0x80] sm:$0xff] %vm1212_vm5, %v1149_v16  ;;  %v1159_v53 = vpop.permute.xlu0 %1158 }
 0x1ef   : > { %1234 = vst.msk [vmem:[#allocation3 + $0xa8] sm:$0xff] %vm1212_vm5, %v1159_v53 }
 0x1f1   : > { %1363 = vrot.lane.b32.xlu2 %v3391_v32, %s2776_s12 }
 0x1f3   : > { %1367 = vrot.lane.b32.xlu1 %v4232_v38, %s2776_s12  ;;  %v1169_v24 = vpop.permute.xlu2 %1168  ;;  %v1826_v38 = vld [vmem:[#allocation2 + $0x3a] sm:$0xff] }
 0x1f4   : > { %1507 = vrot.lane.b32.xlu0 %v1441_v56, %s2777_s13  ;;  %1239 = vst.msk [vmem:[#allocation3 + $0xd0] sm:$0xff] %vm1212_vm5, %v1169_v24  ;;  %v1834_v24 = vld [vmem:[#allocation2 + $0x9a] sm:$0xff] }
 0x1f5   : > { %v1155_v62 = vpop.permute.xlu1 %1154 }
 0x1f6   : > { %1232 = vst.msk [vmem:[#allocation3 + $0x98] sm:$0xff] %vm1212_vm5, %v1155_v62  ;;  %v1165_v23 = vpop.permute.xlu0 %1164  ;;  %v1650_v62 = vld [vmem:[#allocation2 + $0x109] sm:$0xff] }
 0x1f7   : > { %1237 = vst.msk [vmem:[#allocation3 + $0xc0] sm:$0xff] %vm1212_vm5, %v1165_v23 }
 0x1f9   : > { %1369 = vrot.lane.b32.xlu2 %v3711_v61, %s2776_s12  ;;  %s2500_s12 = sshll.u32 %s237_s8, 8 }
 0x1fb   : > { %1503 = vrot.lane.b32.xlu1 %v1439_v13, %s2777_s13  ;;  %v1175_v32 = vpop.permute.xlu2 %1174 }
 0x1fc   : > { %1513 = vrot.lane.b32.xlu0 %v3190_v40, %s2777_s13  ;;  %1242 = vst.msk [vmem:[#allocation3 + $0xe8] sm:$0xff] %vm1212_vm5, %v1175_v32 }
 0x1fd   : > { %v1161_v35 = vpop.permute.xlu1 %1160 }
 0x1fe   : > { %1235 = vst.msk [vmem:[#allocation3 + $0xb0] sm:$0xff] %vm1212_vm5, %v1161_v35  ;;  %v1171_v30 = vpop.permute.xlu0 %1170  ;;  %v1457_v35 = vld [vmem:[#allocation2 + $0x108] sm:$0xff] }
 0x1ff   : > { %1240 = vst.msk [vmem:[#allocation3 + $0xd8] sm:$0xff] %vm1212_vm5, %v1171_v30  ;;  %v1465_v30 = vld [vmem:[#allocation2 + $0x168] sm:$0xff] }
 0x201   : > { %1505 = vrot.lane.b32.xlu2 %v1440_v28, %s2777_s13  ;;  %v1659_v28 = vld [vmem:[#allocation2 + $0x171] sm:$0xff] }
 0x203   : > { %1509 = vrot.lane.b32.xlu1 %v3198_v42, %s2777_s13  ;;  %v1310_v43 = vpop.permute.xlu2 %1309 }
 0x204   : > { %1519 = vrot.lane.b32.xlu0 %v3216_v52, %s2777_s13  ;;  %1406 = vst.msk [vmem:[#allocation3] sm:$0xff] %vm1405_vm6, %v1310_v43 }
 0x205   : > { %v1167_v40 = vpop.permute.xlu1 %1166 }
 0x206   : > { %1238 = vst.msk [vmem:[#allocation3 + $0xc8] sm:$0xff] %vm1212_vm5, %v1167_v40  ;;  %v1177_v12 = vpop.permute.xlu0 %1176 }
 0x207   : > { %1243 = vst.msk [vmem:[#allocation3 + $0xf0] sm:$0xff] %vm1212_vm5, %v1177_v12 }
 0x209   : > { %1511 = vrot.lane.b32.xlu2 %v1443_v29, %s2777_s13  ;;  %v1466_v29 = vld [vmem:[#allocation2 + $0x170] sm:$0xff] }
 0x20b   : > { %1515 = vrot.lane.b32.xlu1 %v3223_v55, %s2777_s13  ;;  %v1316_v25 = vpop.permute.xlu2 %1315 }
 0x20c   : > { %1525 = vrot.lane.b32.xlu0 %v3241_v2, %s2777_s13  ;;  %1409 = vst.msk [vmem:[#allocation3 + $0x18] sm:$0xff] %vm1405_vm6, %v1316_v25  ;;  %v1651_v25 = vld [vmem:[#allocation2 + $0x111] sm:$0xff] }
 0x20d   : > { %v1173_v42 = vpop.permute.xlu1 %1172 }
 0x20e   : > { %1241 = vst.msk [vmem:[#allocation3 + $0xe0] sm:$0xff] %vm1212_vm5, %v1173_v42  ;;  %v1312_v52 = vpop.permute.xlu0 %1311  ;;  %v1851_v42 = vld [vmem:[#allocation2 + $0x16a] sm:$0xff] }
 0x20f   : > { %1407 = vst.msk [vmem:[#allocation3 + $0x8] sm:$0xff] %vm1405_vm6, %v1312_v52 }
 0x211   : > { %1517 = vrot.lane.b32.xlu2 %v1446_v50, %s2777_s13 }
 0x213   : > { %1521 = vrot.lane.b32.xlu1 %v3253_v18, %s2777_s13  ;;  %v1322_v36 = vpop.permute.xlu2 %1321 }
 0x214   : > { %1535 = vrot.lane.b32.xlu0 %v3302_v57, %s2777_s13  ;;  %1412 = vst.msk [vmem:[#allocation3 + $0x30] sm:$0xff] %vm1405_vm6, %v1322_v36 }
 0x215   : > { %v1179_v55 = vpop.permute.xlu1 %1178 }
 0x216   : > { %1244 = vst.msk [vmem:[#allocation3 + $0xf8] sm:$0xff] %vm1212_vm5, %v1179_v55  ;;  %v1318_v2 = vpop.permute.xlu0 %1317  ;;  %v1658_v55 = vld [vmem:[#allocation2 + $0x169] sm:$0xff] }
 0x217   : > { %1410 = vst.msk [vmem:[#allocation3 + $0x20] sm:$0xff] %vm1405_vm6, %v1318_v2  ;;  %v1843_v2 = vld [vmem:[#allocation2 + $0x10a] sm:$0xff] }
 0x219   : > { %1523 = vrot.lane.b32.xlu2 %v1449_v31, %s2777_s13  ;;  %v1635_v31 = vld [vmem:[#allocation2 + $0x51] sm:$0xff] }
 0x21b   : > { %1527 = vrot.lane.b32.xlu1 %v3280_v21, %s2777_s13  ;;  %v1328_v58 = vpop.permute.xlu2 %1327 }
 0x21c   : > { %1553 = vrot.lane.b32.xlu0 %v3383_v45, %s2777_s13  ;;  %1415 = vst.msk [vmem:[#allocation3 + $0x48] sm:$0xff] %vm1405_vm6, %v1328_v58 }
 0x21d   : > { %v1314_v57 = vpop.permute.xlu1 %1313 }
 0x21e   : > { %1408 = vst.msk [vmem:[#allocation3 + $0x10] sm:$0xff] %vm1405_vm6, %v1314_v57  ;;  %v1324_v18 = vpop.permute.xlu0 %1323 }
 0x21f   : > { %1413 = vst.msk [vmem:[#allocation3 + $0x38] sm:$0xff] %vm1405_vm6, %v1324_v18 }
 0x221   : > { %1529 = vrot.lane.b32.xlu2 %v1452_v44, %s2777_s13  ;;  %v1844_v44 = vld [vmem:[#allocation2 + $0x112] sm:$0xff] }
 0x223   : > { %1537 = vrot.lane.b32.xlu1 %v3295_v37, %s2777_s13  ;;  %v1334_v21 = vpop.permute.xlu2 %1333 }
 0x224   : > { %1744 = vrot.lane.b32.xlu0 %v1656_v39, %s2778_s14  ;;  %1418 = vst.msk [vmem:[#allocation3 + $0x60] sm:$0xff] %vm1405_vm6, %v1334_v21  ;;  %v1852_v39 = vld [vmem:[#allocation2 + $0x172] sm:$0xff]  ;;  %v1827_v21 = vld [vmem:[#allocation2 + $0x4a] sm:$0xff] }
 0x225   : > { %v1320_v45 = vpop.permute.xlu1 %1319 }
 0x226   : > { %1411 = vst.msk [vmem:[#allocation3 + $0x28] sm:$0xff] %vm1405_vm6, %v1320_v45  ;;  %v1330_v63 = vpop.permute.xlu0 %1329 }
 0x227   : > { %1416 = vst.msk [vmem:[#allocation3 + $0x50] sm:$0xff] %vm1405_vm6, %v1330_v63 }
 0x229   : > { %1551 = vrot.lane.b32.xlu2 %v3388_v22, %s2777_s13 }
 0x22b   : > { %1728 = vrot.lane.b32.xlu1 %v1648_v51, %s2778_s14  ;;  %v1340_v37 = vpop.permute.xlu2 %1339 }
 0x22c   : > { %1923 = vrot.lane.b32.xlu0 %v1842_v46, %s2779_s21  ;;  %1421 = vst.msk [vmem:[#allocation3 + $0x78] sm:$0xff] %vm1405_vm6, %v1340_v37  ;;  %v1634_v46 = vld [vmem:[#allocation2 + $0x49] sm:$0xff] }
 0x22d   : > { %v1326_v3 = vpop.permute.xlu1 %1325  ;;  %v1642_v37 = vld [vmem:[#allocation2 + $0xa9] sm:$0xff] }
 0x22e   : > { %1414 = vst.msk [vmem:[#allocation3 + $0x40] sm:$0xff] %vm1405_vm6, %v1326_v3  ;;  %v1336_v59 = vpop.permute.xlu0 %1335  ;;  %v1836_v3 = vld [vmem:[#allocation2 + $0xb2] sm:$0xff] }
 0x22f   : > { %1419 = vst.msk [vmem:[#allocation3 + $0x68] sm:$0xff] %vm1405_vm6, %v1336_v59 }
 0x231   : > { %1730 = vrot.lane.b32.xlu2 %v1649_v54, %s2778_s14 }
 0x233   : > { %1746 = vrot.lane.b32.xlu1 %v1657_v7, %s2778_s14  ;;  %v1346_v22 = vpop.permute.xlu2 %1345 }
 0x234   : > { %1696 = vrot.lane.b32.xlu0 %v1632_v0, %s2778_s14  ;;  %1424 = vst.msk [vmem:[#allocation3 + $0x90] sm:$0xff] %vm1405_vm6, %v1346_v22  ;;  %v1643_v0 = vld [vmem:[#allocation2 + $0xb1] sm:$0xff] }
 0x235   : > { %v1332_v60 = vpop.permute.xlu1 %1331  ;;  %v2070_v22 = vld [vmem:[%s4140_s1 + $0x10] sm:$0x3] }
 0x236   : > { %1417 = vst.msk [vmem:[#allocation3 + $0x58] sm:$0xff] %vm1405_vm6, %v1332_v60  ;;  %v1342_v10 = vpop.permute.xlu0 %1341  ;;  %v1828_v60 = vld [vmem:[#allocation2 + $0x52] sm:$0xff] }
 0x237   : > { %1422 = vst.msk [vmem:[#allocation3 + $0x80] sm:$0xff] %vm1405_vm6, %v1342_v10  ;;  %v2080_v10 = vunpack.c.l.b16 %v2070_v22  ;;  %v1848_v22 = vld [vmem:[#allocation2 + $0x142] sm:$0xff] }
 0x239   : > { %1921 = vrot.lane.b32.xlu2 %v1841_v1, %s2779_s21  ;;  %v2083_v1 = vpack.c.b16 %v2080_v10, %v2080_v10 }
 0x23b   : > { %1937 = vrot.lane.b32.xlu1 %v1849_v4, %s2779_s21  ;;  %v1352_v8 = vpop.permute.xlu2 %1351 }
 0x23c   : > { %1714 = vrot.lane.b32.xlu0 %v1641_v15, %s2778_s14  ;;  %1427 = vst.msk [vmem:[#allocation3 + $0xa8] sm:$0xff] %vm1405_vm6, %v1352_v8  ;;  %v2137_v15 = vsel %vm2135_vm8, %v2083_v1, 0 }
 0x23d   : > { %v1338_v5 = vpop.permute.xlu1 %1337  ;;  %2616 = vmatpush.bf16.msra.mxu2 %v2137_v15  ;;  %2617 = vmatpush.bf16.msra.mxu3 %v2137_v15 }
 0x23e   : > { %1420 = vst.msk [vmem:[#allocation3 + $0x70] sm:$0xff] %vm1405_vm6, %v1338_v5  ;;  %v1348_v27 = vpop.permute.xlu0 %1347  ;;  %2144 = vmatpush.bf16.msra.mxu0 %v2137_v15  ;;  %2615 = vmatpush.bf16.msra.mxu1 %v2137_v15 }
 0x23f   : > { %1425 = vst.msk [vmem:[#allocation3 + $0x98] sm:$0xff] %vm1405_vm6, %v1348_v27  ;;  %v1835_v27 = vld [vmem:[#allocation2 + $0xaa] sm:$0xff] }
 0x241   : > { %1939 = vrot.lane.b32.xlu2 %v1850_v6, %s2779_s21  ;;  %v2534_v6 = vld [vmem:[%s4140_s1 + $0x8] sm:$0xff] }
 0x242   : > { %2619 = vmatpush.bf16.msra.mxu2 %v2534_v6  ;;  %2620 = vmatpush.bf16.msra.mxu3 %v2534_v6 }
 0x243   : > { %1698 = vrot.lane.b32.xlu1 %v1633_v11, %s2778_s14  ;;  %v1358_v34 = vpop.permute.xlu2 %1357  ;;  %v1459_v11 = vld [vmem:[#allocation2 + $0x120] sm:$0xff]  ;;  %2145 = vmatpush.bf16.msra.mxu0 %v2534_v6 }
 0x244   : > { %1905 = vrot.lane.b32.xlu0 %v1833_v9, %s2779_s21  ;;  %1430 = vst.msk [vmem:[#allocation3 + $0xc0] sm:$0xff] %vm1405_vm6, %v1358_v34  ;;  %v2533_v34 = vld [vmem:[%s4140_s1] sm:$0xff]  ;;  %2618 = vmatpush.bf16.msra.mxu1 %v2534_v6  ;;  %v1453_v6 = vld [vmem:[#allocation2 + $0xd8] sm:$0xff] }
 0x245   : > { %v1344_v49 = vpop.permute.xlu1 %1343 }
 0x246   : > { %1423 = vst.msk [vmem:[#allocation3 + $0x88] sm:$0xff] %vm1405_vm6, %v1344_v49  ;;  %v1354_v33 = vpop.permute.xlu0 %1353  ;;  %2622 = vmatpush.bf16.msra.mxu2 %v2533_v34  ;;  %2623 = vmatpush.bf16.msra.mxu3 %v2533_v34 }
 0x247   : > { %1428 = vst.msk [vmem:[#allocation3 + $0xb0] sm:$0xff] %vm1405_vm6, %v1354_v33  ;;  %2146 = vmatpush.bf16.msra.mxu0 %v2533_v34 }
 0x248   : > { %2621 = vmatpush.bf16.msra.mxu1 %v2533_v34  ;;  %v1847_v34 = vld [vmem:[#allocation2 + $0x13a] sm:$0xff] }
 0x249   : > { %1712 = vrot.lane.b32.xlu2 %v1640_v41, %s2778_s14  ;;  %v1460_v41 = vld [vmem:[#allocation2 + $0x128] sm:$0xff] }
 0x24b   : > { %1889 = vrot.lane.b32.xlu1 %v1825_v14, %s2779_s21  ;;  %v1364_v16 = vpop.permute.xlu2 %1363  ;;  %v1845_v14 = vld [vmem:[#allocation2 + $0x122] sm:$0xff] }
 0x24c   : > { %1541 = vrot.lane.b32.xlu0 %v1458_v17, %s2777_s13  ;;  %1433 = vst.msk [vmem:[#allocation3 + $0xd8] sm:$0xff] %vm1405_vm6, %v1364_v16 }
 0x24d   : > { %v1350_v53 = vpop.permute.xlu1 %1349 }
 0x24e   : > { %1426 = vst.msk [vmem:[#allocation3 + $0xa0] sm:$0xff] %vm1405_vm6, %v1350_v53  ;;  %v1360_v56 = vpop.permute.xlu0 %1359 }
 0x24f   : > { %1431 = vst.msk [vmem:[#allocation3 + $0xc8] sm:$0xff] %vm1405_vm6, %v1360_v56  ;;  %v1652_v56 = vld [vmem:[#allocation2 + $0x121] sm:$0xff] }
 0x251   : > { %1891 = vrot.lane.b32.xlu2 %v1826_v38, %s2779_s21 }
 0x253   : > { %1907 = vrot.lane.b32.xlu1 %v1834_v24, %s2779_s21  ;;  %v1370_v23 = vpop.permute.xlu2 %1369 }
 0x254   : > { %1732 = vrot.lane.b32.xlu0 %v1650_v62, %s2778_s14  ;;  %1436 = vst.msk [vmem:[#allocation3 + $0xf0] sm:$0xff] %vm1405_vm6, %v1370_v23  ;;  %v1846_v62 = vld [vmem:[#allocation2 + $0x12a] sm:$0xff]  ;;  %v1644_v23 = vld [vmem:[#allocation2 + $0xc1] sm:$0xff] }
 0x255   : > { %v1356_v13 = vpop.permute.xlu1 %1355 }
 0x256   : > { %1429 = vst.msk [vmem:[#allocation3 + $0xb8] sm:$0xff] %vm1405_vm6, %v1356_v13  ;;  %v1366_v32 = vpop.permute.xlu0 %1365 }
 0x257   : > { %1434 = vst.msk [vmem:[#allocation3 + $0xe0] sm:$0xff] %vm1405_vm6, %v1366_v32 }
 0x259   : > { %1539 = vrot.lane.b32.xlu2 %v1457_v35, %s2777_s13 }
 0x25b   : > { %1555 = vrot.lane.b32.xlu1 %v1465_v30, %s2777_s13  ;;  %v1506_v43 = vpop.permute.xlu2 %1505  ;;  %v1636_v30 = vld [vmem:[#allocation2 + $0x61] sm:$0xff] }
 0x25c   : > { %1750 = vrot.lane.b32.xlu0 %v1659_v28, %s2778_s14  ;;  %1601 = vst.msk [vmem:[#allocation3 + $0x8] sm:$0xff] %vm1599_vm7, %v1506_v43  ;;  %v1830_v28 = vld [vmem:[#allocation2 + $0x6a] sm:$0xff] }
 0x25d   : > { %v1362_v40 = vpop.permute.xlu1 %1361 }
 0x25e   : > { %1432 = vst.msk [vmem:[#allocation3 + $0xd0] sm:$0xff] %vm1405_vm6, %v1362_v40  ;;  %v1372_v12 = vpop.permute.xlu0 %1371 }
 0x25f   : > { %1437 = vst.msk [vmem:[#allocation3 + $0xf8] sm:$0xff] %vm1405_vm6, %v1372_v12 }
 0x261   : > { %1557 = vrot.lane.b32.xlu2 %v1466_v29, %s2777_s13  ;;  %v1637_v29 = vld [vmem:[#allocation2 + $0x69] sm:$0xff] }
 0x263   : > { %1734 = vrot.lane.b32.xlu1 %v1651_v25, %s2778_s14  ;;  %v1512_v52 = vpop.permute.xlu2 %1511  ;;  %v1645_v25 = vld [vmem:[#allocation2 + $0xc9] sm:$0xff] }
 0x264   : > { %1941 = vrot.lane.b32.xlu0 %v1851_v42, %s2779_s21  ;;  %1604 = vst.msk [vmem:[#allocation3 + $0x20] sm:$0xff] %vm1599_vm7, %v1512_v52  ;;  %v1461_v42 = vld [vmem:[#allocation2 + $0x138] sm:$0xff] }
 0x265   : > { %v1368_v50 = vpop.permute.xlu1 %1367 }
 0x266   : > { %1435 = vst.msk [vmem:[#allocation3 + $0xe8] sm:$0xff] %vm1405_vm6, %v1368_v50  ;;  %v1508_v36 = vpop.permute.xlu0 %1507 }
 0x267   : > { %1602 = vst.msk [vmem:[#allocation3 + $0x10] sm:$0xff] %vm1599_vm7, %v1508_v36 }
 0x269   : > { %1748 = vrot.lane.b32.xlu2 %v1658_v55, %s2778_s14 }
 0x26b   : > { %1925 = vrot.lane.b32.xlu1 %v1843_v2, %s2779_s21  ;;  %v1518_v58 = vpop.permute.xlu2 %1517 }
 0x26c   : > { %1702 = vrot.lane.b32.xlu0 %v1635_v31, %s2778_s14  ;;  %1607 = vst.msk [vmem:[#allocation3 + $0x38] sm:$0xff] %vm1599_vm7, %v1518_v58  ;;  %v1829_v31 = vld [vmem:[#allocation2 + $0x62] sm:$0xff] }
 0x26d   : > { %v1504_v57 = vpop.permute.xlu1 %1503  ;;  %v1837_v58 = vld [vmem:[#allocation2 + $0xc2] sm:$0xff] }
 0x26e   : > { %1600 = vst.msk [vmem:[#allocation3] sm:$0xff] %vm1599_vm7, %v1504_v57  ;;  %v1514_v18 = vpop.permute.xlu0 %1513  ;;  %v1470_v57 = vld [vmem:[#allocation2 + $0x1a0] sm:$0xff] }
 0x26f   : > { %1605 = vst.msk [vmem:[#allocation3 + $0x28] sm:$0xff] %vm1599_vm7, %v1514_v18 }
 0x271   : > { %1927 = vrot.lane.b32.xlu2 %v1844_v44, %s2779_s21 }
 0x273   : > { %1943 = vrot.lane.b32.xlu1 %v1852_v39, %s2779_s21  ;;  %v1524_v45 = vpop.permute.xlu2 %1523 }
 0x274   : > { %1893 = vrot.lane.b32.xlu0 %v1827_v21, %s2779_s21  ;;  %1610 = vst.msk [vmem:[#allocation3 + $0x50] sm:$0xff] %vm1599_vm7, %v1524_v45  ;;  %v1838_v21 = vld [vmem:[#allocation2 + $0xca] sm:$0xff]  ;;  %v1462_v45 = vld [vmem:[#allocation2 + $0x140] sm:$0xff] }
 0x275   : > { %v1510_v63 = vpop.permute.xlu1 %1509 }
 0x276   : > { %1603 = vst.msk [vmem:[#allocation3 + $0x18] sm:$0xff] %vm1599_vm7, %v1510_v63  ;;  %v1520_v51 = vpop.permute.xlu0 %1519  ;;  %v1662_v63 = vld [vmem:[#allocation2 + $0x199] sm:$0xff] }
 0x277   : > { %1608 = vst.msk [vmem:[#allocation3 + $0x40] sm:$0xff] %vm1599_vm7, %v1520_v51 }
 0x279   : > { %1700 = vrot.lane.b32.xlu2 %v1634_v46, %s2778_s14 }
 0x27b   : > { %1716 = vrot.lane.b32.xlu1 %v1642_v37, %s2778_s14  ;;  %v1530_v59 = vpop.permute.xlu2 %1529 }
 0x27c   : > { %1911 = vrot.lane.b32.xlu0 %v1836_v3, %s2779_s21  ;;  %1613 = vst.msk [vmem:[#allocation3 + $0x68] sm:$0xff] %vm1599_vm7, %v1530_v59 }
 0x27d   : > { %v1516_v54 = vpop.permute.xlu1 %1515 }
 0x27e   : > { %1606 = vst.msk [vmem:[#allocation3 + $0x30] sm:$0xff] %vm1599_vm7, %v1516_v54  ;;  %v1526_v7 = vpop.permute.xlu0 %1525 }
 0x27f   : > { %1611 = vst.msk [vmem:[#allocation3 + $0x58] sm:$0xff] %vm1599_vm7, %v1526_v7  ;;  %v1469_v7 = vld [vmem:[#allocation2 + $0x198] sm:$0xff] }
 0x281   : > { %1718 = vrot.lane.b32.xlu2 %v1643_v0, %s2778_s14  ;;  %v1654_v0 = vld [vmem:[#allocation2 + $0x139] sm:$0xff] }
 0x283   : > { %1895 = vrot.lane.b32.xlu1 %v1828_v60, %s2779_s21  ;;  %v1552_v4 = vpop.permute.xlu2 %1551 }
 0x284   : > { %1559 = vrot.lane.b32.xlu0 %v3505_v20, %s2777_s13  ;;  %1624 = vst.msk [vmem:[#allocation3 + $0xc0] sm:$0xff] %vm1599_vm7, %v1552_v4  ;;  %v1653_v20 = vld [vmem:[#allocation2 + $0x129] sm:$0xff] }
 0x285   : > { %v1522_v8 = vpop.permute.xlu1 %1521 }
 0x286   : > { %1609 = vst.msk [vmem:[#allocation3 + $0x48] sm:$0xff] %vm1599_vm7, %v1522_v8  ;;  %v1536_v5 = vpop.permute.xlu0 %1535 }
 0x287   : > { %1616 = vst.msk [vmem:[#allocation3 + $0x80] sm:$0xff] %vm1599_vm7, %v1536_v5  ;;  %v1655_v5 = vld [vmem:[#allocation2 + $0x141] sm:$0xff] }
 0x289   : > { %1909 = vrot.lane.b32.xlu2 %v1835_v27, %s2779_s21  ;;  %v1663_v27 = vld [vmem:[#allocation2 + $0x1a1] sm:$0xff] }
 0x28b   : > { %1543 = vrot.lane.b32.xlu1 %v1459_v11, %s2777_s13  ;;  %v1731_v9 = vpop.permute.xlu2 %1730 }
 0x28c   : > { %1738 = vrot.lane.b32.xlu0 %v1653_v20, %s2778_s14 }
 0x28d   : > { %v1528_v49 = vpop.permute.xlu1 %1527 }
 0x28e   : > { %1612 = vst.msk [vmem:[#allocation3 + $0x60] sm:$0xff] %vm1599_vm7, %v1528_v49  ;;  %v1554_v33 = vpop.permute.xlu0 %1553  ;;  %v1855_v49 = vld [vmem:[#allocation2 + $0x19a] sm:$0xff] }
 0x28f   : > { %1625 = vst.msk [vmem:[#allocation3 + $0xc8] sm:$0xff] %vm1599_vm7, %v1554_v33  ;;  %v1639_v33 = vld [vmem:[#allocation2 + $0x81] sm:$0xff] }
 0x291   : > { %1545 = vrot.lane.b32.xlu2 %v1460_v41, %s2777_s13 }
 0x293   : > { %1561 = vrot.lane.b32.xlu1 %v3515_v19, %s2777_s13  ;;  %v1922_v17 = vpop.permute.xlu2 %1921 }
 0x294   : > { %1929 = vrot.lane.b32.xlu0 %v1845_v14, %s2779_s21 }
 0x295   : > { %v1538_v16 = vpop.permute.xlu1 %1537 }
 0x296   : > { %1617 = vst.msk [vmem:[#allocation3 + $0x88] sm:$0xff] %vm1599_vm7, %v1538_v16  ;;  %v1745_v53 = vpop.permute.xlu0 %1744  ;;  %v1856_v16 = vld [vmem:[#allocation2 + $0x1a2] sm:$0xff] }
 0x297   : > { %1817 = vst.msk [vmem:[#allocation3 + $0xc0] sm:$0xff] %vm1792_vm9, %v1745_v53  ;;  %v1454_v53 = vld [vmem:[#allocation2 + $0xe0] sm:$0xff] }
 0x298   : > { %1810 = vst.msk [vmem:[#allocation3 + $0x88] sm:$0xff] %vm1792_vm9, %v1731_v9 }
 0x299   : > { %1736 = vrot.lane.b32.xlu2 %v1652_v56, %s2778_s14  ;;  %v1831_v56 = vld [vmem:[#allocation2 + $0x7a] sm:$0xff] }
 0x29b   : > { %1752 = vrot.lane.b32.xlu1 %v3590_v48, %s2778_s14  ;;  %v1940_v38 = vpop.permute.xlu2 %1939 }
 0x29c   : > { %1947 = vrot.lane.b32.xlu0 %v3693_v26, %s2779_s21 }
 0x29d   : > { %v1729_v19 = vpop.permute.xlu1 %1728 }
 0x29e   : > { %1809 = vst.msk [vmem:[#allocation3 + $0x80] sm:$0xff] %vm1792_vm9, %v1729_v19  ;;  %v1924_v24 = vpop.permute.xlu0 %1923 }
 0x29f   : > { %2003 = vst.msk [vmem:[#allocation3 + $0x88] sm:$0xff] %vm1985_vm10, %v1924_v24 }
 0x2a0   : > { %2002 = vst.msk [vmem:[#allocation3 + $0x80] sm:$0xff] %vm1985_vm10, %v1922_v17 }
 0x2a1   : > { %1754 = vrot.lane.b32.xlu2 %v3610_v47, %s2778_s14 }
 0x2a3   : > { %1931 = vrot.lane.b32.xlu1 %v1846_v62, %s2779_s21  ;;  %v1713_v48 = vpop.permute.xlu2 %1712 }
 0x2a4   : > { %1720 = vrot.lane.b32.xlu0 %v1644_v23, %s2778_s14  ;;  %1801 = vst.msk [vmem:[#allocation3 + $0x40] sm:$0xff] %vm1792_vm9, %v1713_v48 }
 0x2a5   : > { %v1747_v26 = vpop.permute.xlu1 %1746 }
 0x2a6   : > { %1818 = vst.msk [vmem:[#allocation3 + $0xc8] sm:$0xff] %vm1792_vm9, %v1747_v26  ;;  %v1697_v13 = vpop.permute.xlu0 %1696  ;;  %v2035_v32 = vld [vmem:[#allocation3 + $0x88] sm:$0xff] }
 0x2a7   : > { %1793 = vst.msk [vmem:[#allocation3] sm:$0xff] %vm1792_vm9, %v1697_v13  ;;  %v2034_v35 = vld [vmem:[#allocation3 + $0x80] sm:$0xff]  ;;  %v1638_v26 = vld [vmem:[#allocation2 + $0x79] sm:$0xff] }
 0x2a8   : > { %2011 = vst.msk [vmem:[#allocation3 + $0xc8] sm:$0xff] %vm1985_vm10, %v1940_v38  ;;  %v2058_v47 = vpack.c.bf16 %v2035_v32, %v2034_v35  ;;  %v1646_v13 = vld [vmem:[#allocation2 + $0xd9] sm:$0xff]  ;;  %v1840_v32 = vld [vmem:[#allocation2 + $0xe2] sm:$0xff] }
 0x2a9   : > { %1945 = vrot.lane.b32.xlu2 %v3711_v61, %s2779_s21 }
 0x2aa   : > { %2519 = vmatmul.msk.bf16.vlgmr.msra.gmra.mxu2 %vm2086_vm11, %v2058_v47 }
 0x2ab   : > { %1704 = vrot.lane.b32.xlu1 %v1636_v30, %s2778_s14  ;;  %v1892_v43 = vpop.permute.xlu2 %1891 }
 0x2ac   : > { %1899 = vrot.lane.b32.xlu0 %v1830_v28, %s2779_s21 }
 0x2ad   : > { %v1938_v40 = vpop.permute.xlu1 %1937 }
 0x2ae   : > { %2010 = vst.msk [vmem:[#allocation3 + $0xc0] sm:$0xff] %vm1985_vm10, %v1938_v40  ;;  %v1715_v12 = vpop.permute.xlu0 %1714 }
 0x2af   : > { %1802 = vst.msk [vmem:[#allocation3 + $0x48] sm:$0xff] %vm1792_vm9, %v1715_v12  ;;  %v2043_v61 = vld [vmem:[#allocation3 + $0xc8] sm:$0xff]  ;;  %v1647_v12 = vld [vmem:[#allocation2 + $0xe1] sm:$0xff] }
 0x2b1   : > { %1706 = vrot.lane.b32.xlu2 %v1637_v29, %s2778_s14  ;;  %v1832_v29 = vld [vmem:[#allocation2 + $0x82] sm:$0xff] }
 0x2b3   : > { %1722 = vrot.lane.b32.xlu1 %v1645_v25, %s2778_s14  ;;  %v1540_v52 = vpop.permute.xlu2 %1539 }
 0x2b4   : > { %1547 = vrot.lane.b32.xlu0 %v1461_v42, %s2777_s13  ;;  %1618 = vst.msk [vmem:[#allocation3 + $0x90] sm:$0xff] %vm1599_vm7, %v1540_v52 }
 0x2b5   : > { %v1699_v50 = vpop.permute.xlu1 %1698  ;;  %v2042_v36 = vld [vmem:[#allocation3 + $0xc0] sm:$0xff] }
 0x2b6   : > { %1794 = vst.msk [vmem:[#allocation3 + $0x8] sm:$0xff] %vm1792_vm9, %v1699_v50  ;;  %v2062_v55 = vpack.c.bf16 %v2043_v61, %v2042_v36  ;;  %v1906_v2 = vpop.permute.xlu0 %1905  ;;  %v1839_v50 = vld [vmem:[#allocation2 + $0xda] sm:$0xff] }
 0x2b7   : > { %1994 = vst.msk [vmem:[#allocation3 + $0x40] sm:$0xff] %vm1985_vm10, %v1906_v2 }
 0x2b8   : > { %2523 = vmatmul.msk.bf16.vlgmr.msra.gmra.mxu3 %vm2086_vm11, %v2062_v55  ;;  %1987 = vst.msk [vmem:[#allocation3 + $0x8] sm:$0xff] %vm1985_vm10, %v1892_v43 }
 0x2b9   : > { %1897 = vrot.lane.b32.xlu2 %v1829_v31, %s2779_s21 }
 0x2bb   : > { %1913 = vrot.lane.b32.xlu1 %v1837_v58, %s2779_s21  ;;  %v1558_v18 = vpop.permute.xlu2 %1557 }
 0x2bc   : > { %1565 = vrot.lane.b32.xlu0 %v1470_v57, %s2777_s13  ;;  %1627 = vst.msk [vmem:[#allocation3 + $0xd8] sm:$0xff] %vm1599_vm7, %v1558_v18 }
 0x2bd   : > { %v1890_v44 = vpop.permute.xlu1 %1889 }
 0x2be   : > { %1986 = vst.msk [vmem:[#allocation3] sm:$0xff] %vm1985_vm10, %v1890_v44  ;;  %v1542_v39 = vpop.permute.xlu0 %1541  ;;  %v2026_v1 = vld [vmem:[#allocation3 + $0x40] sm:$0xff] }
 0x2bf   : > { %1619 = vst.msk [vmem:[#allocation3 + $0x98] sm:$0xff] %vm1599_vm7, %v1542_v39  ;;  %v2019_v51 = vld [vmem:[#allocation3 + $0x8] sm:$0xff] }
 0x2c1   : > { %1915 = vrot.lane.b32.xlu2 %v1838_v21, %s2779_s21 }
 0x2c3   : > { %1549 = vrot.lane.b32.xlu1 %v1462_v45, %s2777_s13  ;;  %v1749_v46 = vpop.permute.xlu2 %1748 }
 0x2c4   : > { %1756 = vrot.lane.b32.xlu0 %v1662_v63, %s2778_s14 }
 0x2c5   : > { %v1908_v37 = vpop.permute.xlu1 %1907  ;;  %v2018_v3 = vld [vmem:[#allocation3] sm:$0xff] }
 0x2c6   : > { %1995 = vst.msk [vmem:[#allocation3 + $0x48] sm:$0xff] %vm1985_vm10, %v1908_v37  ;;  %v2050_v59 = vpack.c.bf16 %v2019_v51, %v2018_v3  ;;  %v1733_v54 = vpop.permute.xlu0 %1732 }
 0x2c7   : > { %1811 = vst.msk [vmem:[#allocation3 + $0x90] sm:$0xff] %vm1792_vm9, %v1733_v54 }
 0x2c8   : > { %2511 = vmatmul.msk.bf16.vlgmr.msra.gmra.mxu0 %vm2086_vm11, %v2050_v59 }
 0x2c9   : > { %1563 = vrot.lane.b32.xlu2 %v1469_v7, %s2777_s13 }
 0x2cb   : > { %1740 = vrot.lane.b32.xlu1 %v1654_v0, %s2778_s14  ;;  %v1928_v60 = vpop.permute.xlu2 %1927 }
 0x2cc   : > { %1935 = vrot.lane.b32.xlu0 %v1848_v22, %s2779_s21 }
 0x2cd   : > { %v1556_v10 = vpop.permute.xlu1 %1555  ;;  %v2027_v4 = vld [vmem:[#allocation3 + $0x48] sm:$0xff] }
 0x2ce   : > { %1626 = vst.msk [vmem:[#allocation3 + $0xd0] sm:$0xff] %vm1599_vm7, %v1556_v10  ;;  %v2054_v15 = vpack.c.bf16 %v2027_v4, %v2026_v1  ;;  %v1751_v8 = vpop.permute.xlu0 %1750 }
 0x2cf   : > { %1820 = vst.msk [vmem:[#allocation3 + $0xd8] sm:$0xff] %vm1792_vm9, %v1751_v8 }
 0x2d0   : > { %2515 = vmatmul.msk.bf16.vlgmr.msra.gmra.mxu1 %vm2086_vm11, %v2054_v15  ;;  %1819 = vst.msk [vmem:[#allocation3 + $0xd0] sm:$0xff] %vm1792_vm9, %v1749_v46 }
 0x2d1   : > { %1742 = vrot.lane.b32.xlu2 %v1655_v5, %s2778_s14 }
 0x2d3   : > { %1758 = vrot.lane.b32.xlu1 %v1663_v27, %s2778_s14  ;;  %v1701_v11 = vpop.permute.xlu2 %1700 }
 0x2d4   : > { %1531 = vrot.lane.b32.xlu0 %v1453_v6, %s2777_s13  ;;  %1795 = vst.msk [vmem:[#allocation3 + $0x10] sm:$0xff] %vm1792_vm9, %v1701_v11 }
 0x2d5   : > { %v1735_v20 = vpop.permute.xlu1 %1734 }
 0x2d6   : > { %1812 = vst.msk [vmem:[#allocation3 + $0x98] sm:$0xff] %vm1792_vm9, %v1735_v20  ;;  %v1942_v9 = vpop.permute.xlu0 %1941 }
 0x2d7   : > { %2012 = vst.msk [vmem:[#allocation3 + $0xd0] sm:$0xff] %vm1985_vm10, %v1942_v9  ;;  %v3965_v9 = vld [vmem:[%s4141_s2] ss:$0 sm:$0xff] }
 0x2d8   : > { %2005 = vst.msk [vmem:[#allocation3 + $0x98] sm:$0xff] %vm1985_vm10, %v1928_v60 }
 0x2d9   : > { %1933 = vrot.lane.b32.xlu2 %v1847_v34, %s2779_s21 }
 0x2db   : > { %1949 = vrot.lane.b32.xlu1 %v1855_v49, %s2779_s21  ;;  %v1719_v41 = vpop.permute.xlu2 %1718  ;;  %v3971_v49 = vld [vmem:[%s4142_s3] ss:$0 sm:$0xff] }
 0x2dc   : > { %1710 = vrot.lane.b32.xlu0 %v1639_v33, %s2778_s14  ;;  %1804 = vst.msk [vmem:[#allocation3 + $0x58] sm:$0xff] %vm1792_vm9, %v1719_v41 }
 0x2dd   : > { %v1926_v14 = vpop.permute.xlu1 %1925 }
 0x2de   : > { %2004 = vst.msk [vmem:[#allocation3 + $0x90] sm:$0xff] %vm1985_vm10, %v1926_v14  ;;  %v1703_v17 = vpop.permute.xlu0 %1702  ;;  %v2044_v47 = vld [vmem:[#allocation3 + $0xd0] sm:$0xff] }
 0x2df   : > { %1796 = vst.msk [vmem:[#allocation3 + $0x18] sm:$0xff] %vm1792_vm9, %v1703_v17  ;;  %v2037_v38 = vld [vmem:[#allocation3 + $0x98] sm:$0xff] }
 0x2e1   : > { %1951 = vrot.lane.b32.xlu2 %v1856_v16, %s2779_s21 }
 0x2e3   : > { %1533 = vrot.lane.b32.xlu1 %v1454_v53, %s2777_s13  ;;  %v1910_v19 = vpop.permute.xlu2 %1909  ;;  %s3979_s13 = scalar_lea.vmem [#allocation4], %s2500_s12 }
 0x2e4   : > { %1901 = vrot.lane.b32.xlu0 %v1831_v56, %s2779_s21  ;;  %s2378_s26 = sshll.u32 %s3979_s13, 4  ;;  %s2379_s26 = int_to_ptr.vmem [resolvable:$true] %s2378_s26 }
 0x2e5   : > { %v1944_v24 = vpop.permute.xlu1 %1943  ;;  %v2036_v62 = vld [vmem:[#allocation3 + $0x90] sm:$0xff] }
 0x2e6   : > { %2013 = vst.msk [vmem:[#allocation3 + $0xd8] sm:$0xff] %vm1985_vm10, %v1944_v24  ;;  %v2059_v23 = vpack.c.bf16 %v2037_v38, %v2036_v62  ;;  %v1894_v48 = vpop.permute.xlu0 %1893 }
 0x2e7   : > { %1988 = vst.msk [vmem:[#allocation3 + $0x10] sm:$0xff] %vm1985_vm10, %v1894_v48 }
 0x2e8   : > { %2520 = vmatmul.msk.bf16.gmra.mxu2 %vm2086_vm11, %v2059_v23 }
 0x2e9   : > { %1708 = vrot.lane.b32.xlu2 %v1638_v26, %s2778_s14 }
 0x2eb   : > { %1724 = vrot.lane.b32.xlu1 %v1646_v13, %s2778_s14  ;;  %v1546_v35 = vpop.permute.xlu2 %1545 }
 0x2ec   : > { %1919 = vrot.lane.b32.xlu0 %v1840_v32, %s2779_s21  ;;  %1621 = vst.msk [vmem:[#allocation3 + $0xa8] sm:$0xff] %vm1599_vm7, %v1546_v35 }
 0x2ed   : > { %v1717_v30 = vpop.permute.xlu1 %1716  ;;  %v2045_v28 = vld [vmem:[#allocation3 + $0xd8] sm:$0xff] }
 0x2ee   : > { %1803 = vst.msk [vmem:[#allocation3 + $0x50] sm:$0xff] %vm1792_vm9, %v1717_v30  ;;  %v2063_v43 = vpack.c.bf16 %v2045_v28, %v2044_v47  ;;  %v1912_v40 = vpop.permute.xlu0 %1911  ;;  %v2020_v58 = vld [vmem:[#allocation3 + $0x10] sm:$0xff] }
 0x2ef   : > { %1997 = vst.msk [vmem:[#allocation3 + $0x58] sm:$0xff] %vm1985_vm10, %v1912_v40 }
 0x2f0   : > { %2524 = vmatmul.msk.bf16.gmra.mxu3 %vm2086_vm11, %v2063_v43  ;;  %1996 = vst.msk [vmem:[#allocation3 + $0x50] sm:$0xff] %vm1985_vm10, %v1910_v19 }
 0x2f1   : > { %1726 = vrot.lane.b32.xlu2 %v1647_v12, %s2778_s14  ;;  %s2535_s14 = sshll.u32 %s2761_s18, 8  ;;  %s2365_s18 = scalar_lea.sflag [#allocation5], %s237_s8 }
 0x2f2   : > { %s2377_s24 = scalar_lea.hbm %s4143_s4, %s2535_s14 }
 0x2f3   : > { %1903 = vrot.lane.b32.xlu1 %v1832_v29, %s2779_s21  ;;  %v1737_v25 = vpop.permute.xlu2 %1736  ;;  %s2380_s29 = sshll.u32 %s2377_s24, 4  ;;  %s2381_s29 = int_to_ptr.hbm [resolvable:$true] %s2380_s29 }
 0x2f4   : > { %s2705_s30 = sshra.s32 %s2381_s29, 4  ;;  %s2706_s30 = int_to_ptr.hbm [resolvable:$true] %s2705_s30 }
 0x2f5   : > { %v1896_v42 = vpop.permute.xlu1 %1895  ;;  %s2707_s5 = scalar_lea.hbm %s2706_s30, 256  ;;  %p2712_p1 = scmp.lt.s32.totalorder %s2706_s30, %s4143_s4 }
 0x2f6   : > { %1989 = vst.msk [vmem:[#allocation3 + $0x18] sm:$0xff] %vm1985_vm10, %v1896_v42  ;;  %v1560_v61 = vpop.permute.xlu0 %1559  ;;  %v2029_v52 = vld [vmem:[#allocation3 + $0x58] sm:$0xff]  ;;  %p2708_p12 = scmp.ne.s32.totalorder %s2706_s30, %s2707_s5  ;;  %p2713_p2 = scmp.lt.s32.totalorder %s2711_s10, %s2707_s5 }
 0x2f7   : > { %1628 = vst.msk [vmem:[#allocation3 + $0xe0] sm:$0xff] %vm1599_vm7, %v1560_v61  ;;  %v2028_v36 = vld [vmem:[#allocation3 + $0x50] sm:$0xff] }
 0x2f8   : > { %v2055_v55 = vpack.c.bf16 %v2029_v52, %v2028_v36  ;;  %p2709_p13 = pnand %p2708_p12, %p2846_p4  ;;  %p2714_p3 = por %p2713_p2, %p2712_p1 }
 0x2f9   : > { %1917 = vrot.lane.b32.xlu2 %v1839_v50, %s2779_s21 }
 0x2fa   : > { %2516 = vmatmul.msk.bf16.gmra.mxu1 %vm2086_vm11, %v2055_v55  ;;  %p2710_p0 = pneg %p2709_p13 }
 0x2fb   : > { %v1755_v2 = vpop.permute.xlu2 %1754 }
 0x2fc   : > { %p2715_p5 = pnand %p2714_p3, %p2710_p0 }
 0x2fd   : > { %v1544_v31 = vpop.permute.xlu1 %1543  ;;  %v2021_v57 = vld [vmem:[#allocation3 + $0x18] sm:$0xff] }
 0x2fe   : > { %1620 = vst.msk [vmem:[#allocation3 + $0xa0] sm:$0xff] %vm1599_vm7, %v1544_v31  ;;  %v2051_v18 = vpack.c.bf16 %v2021_v57, %v2020_v58  ;;  %v1739_v44 = vpop.permute.xlu0 %1738 }
 0x2ff   : > { %1814 = vst.msk [vmem:[#allocation3 + $0xa8] sm:$0xff] %vm1792_vm9, %v1739_v44 }
 0x300   : > { %2512 = vmatmul.msk.bf16.gmra.mxu0 %vm2086_vm11, %v2051_v18  ;;  %1813 = vst.msk [vmem:[#allocation3 + $0xa0] sm:$0xff] %vm1792_vm9, %v1737_v25 }
 0x303   : > { %v1946_v39 = vpop.permute.xlu2 %1945 }
 0x305   : > { %v1562_v21 = vpop.permute.xlu1 %1561 }
 0x306   : > { %1629 = vst.msk [vmem:[#allocation3 + $0xe8] sm:$0xff] %vm1599_vm7, %v1562_v21  ;;  %v1930_v45 = vpop.permute.xlu0 %1929 }
 0x307   : > { %2006 = vst.msk [vmem:[#allocation3 + $0xa0] sm:$0xff] %vm1985_vm10, %v1930_v45 }
 0x308   : > { %1822 = vst.msk [vmem:[#allocation3 + $0xe8] sm:$0xff] %vm1792_vm9, %v1755_v2 }
 0x30b   : > { %v1707_v63 = vpop.permute.xlu2 %1706 }
 0x30c   : > { %1798 = vst.msk [vmem:[#allocation3 + $0x28] sm:$0xff] %vm1792_vm9, %v1707_v63 }
 0x30d   : > { %v1753_v51 = vpop.permute.xlu1 %1752 }
 0x30e   : > { %1821 = vst.msk [vmem:[#allocation3 + $0xe0] sm:$0xff] %vm1792_vm9, %v1753_v51  ;;  %v1948_v46 = vpop.permute.xlu0 %1947  ;;  %v2038_v10 = vld [vmem:[#allocation3 + $0xa0] sm:$0xff] }
 0x30f   : > { %2015 = vst.msk [vmem:[#allocation3 + $0xe8] sm:$0xff] %vm1985_vm10, %v1948_v46 }
 0x310   : > { %2014 = vst.msk [vmem:[#allocation3 + $0xe0] sm:$0xff] %vm1985_vm10, %v1946_v39 }
 0x313   : > { %v1898_v37 = vpop.permute.xlu2 %1897 }
 0x315   : > { %v1932_v3 = vpop.permute.xlu1 %1931 }
 0x316   : > { %2007 = vst.msk [vmem:[#allocation3 + $0xa8] sm:$0xff] %vm1985_vm10, %v1932_v3  ;;  %v1721_v59 = vpop.permute.xlu0 %1720  ;;  %v2047_v54 = vld [vmem:[#allocation3 + $0xe8] sm:$0xff] }
 0x317   : > { %1805 = vst.msk [vmem:[#allocation3 + $0x60] sm:$0xff] %vm1792_vm9, %v1721_v59  ;;  %v2046_v7 = vld [vmem:[#allocation3 + $0xe0] sm:$0xff] }
 0x318   : > { %v2064_v0 = vpack.c.bf16 %v2047_v54, %v2046_v7 }
 0x31a   : > { %2525 = vmatmul.msk.bf16.gmra.mxu3 %vm2086_vm11, %v2064_v0 }
 0x31b   : > { %v1916_v22 = vpop.permute.xlu2 %1915 }
 0x31d   : > { %v1705_v60 = vpop.permute.xlu1 %1704  ;;  %v2039_v1 = vld [vmem:[#allocation3 + $0xa8] sm:$0xff] }
 0x31e   : > { %1797 = vst.msk [vmem:[#allocation3 + $0x20] sm:$0xff] %vm1792_vm9, %v1705_v60  ;;  %v2060_v4 = vpack.c.bf16 %v2039_v1, %v2038_v10  ;;  %v1900_v15 = vpop.permute.xlu0 %1899 }
 0x31f   : > { %1991 = vst.msk [vmem:[#allocation3 + $0x28] sm:$0xff] %vm1985_vm10, %v1900_v15 }
 0x320   : > { %2521 = vmatmul.msk.bf16.gmra.mxu2 %vm2086_vm11, %v2060_v4  ;;  %1990 = vst.msk [vmem:[#allocation3 + $0x20] sm:$0xff] %vm1985_vm10, %v1898_v37 }
 0x323   : > { %v1564_v8 = vpop.permute.xlu2 %1563 }
 0x324   : > { %1630 = vst.msk [vmem:[#allocation3 + $0xf0] sm:$0xff] %vm1599_vm7, %v1564_v8 }
 0x325   : > { %v1723_v5 = vpop.permute.xlu1 %1722 }
 0x326   : > { %1806 = vst.msk [vmem:[#allocation3 + $0x68] sm:$0xff] %vm1792_vm9, %v1723_v5  ;;  %v1548_v27 = vpop.permute.xlu0 %1547  ;;  %v2023_v6 = vld [vmem:[#allocation3 + $0x28] sm:$0xff] }
 0x327   : > { %1622 = vst.msk [vmem:[#allocation3 + $0xb0] sm:$0xff] %vm1599_vm7, %v1548_v27  ;;  %v2022_v11 = vld [vmem:[#allocation3 + $0x20] sm:$0xff] }
 0x328   : > { %1999 = vst.msk [vmem:[#allocation3 + $0x68] sm:$0xff] %vm1985_vm10, %v1916_v22  ;;  %v2052_v20 = vpack.c.bf16 %v2023_v6, %v2022_v11 }
 0x32a   : > { %2513 = vmatmul.msk.bf16.gmra.mxu0 %vm2086_vm11, %v2052_v20 }
 0x32b   : > { %v1743_v34 = vpop.permute.xlu2 %1742 }
 0x32d   : > { %v1914_v33 = vpop.permute.xlu1 %1913  ;;  %v2188_v41 = vpop.f32.mrf.mxu2 }
 0x32e   : > { %1998 = vst.msk [vmem:[#allocation3 + $0x60] sm:$0xff] %vm1985_vm10, %v1914_v33  ;;  %v2248_v14 = vmul.f32 %v3965_v9, %v2188_v41  ;;  %v1566_v17 = vpop.permute.xlu0 %1565 }
 0x32f   : > { %1631 = vst.msk [vmem:[#allocation3 + $0xf8] sm:$0xff] %vm1599_vm7, %v1566_v17  ;;  %v2031_v56 = vld [vmem:[#allocation3 + $0x68] sm:$0xff] }
 0x330   : > { %v2284_v16 = vadd.f32 %v3971_v49, %v2248_v14 }
 0x332   : > { %v2316_v53 = vmax.f32 %v2284_v16, 0.0 }
 0x333   : > { %v1934_v38 = vpop.permute.xlu2 %1933 }
 0x334   : > { %2348 = vst [vmem:[%s3979_s13 + $0x80] sm:$0xff] %v2316_v53 }
 0x335   : > { %v1550_v19 = vpop.permute.xlu1 %1549  ;;  %v2030_v24 = vld [vmem:[#allocation3 + $0x60] sm:$0xff]  ;;  %v2190_v62 = vpop.f32.mrf.mxu2 }
 0x336   : > { %1623 = vst.msk [vmem:[#allocation3 + $0xb8] sm:$0xff] %vm1599_vm7, %v1550_v19  ;;  %v2056_v23 = vpack.c.bf16 %v2031_v56, %v2030_v24  ;;  %v2249_v48 = vmul.f32 %v3965_v9, %v2190_v62  ;;  %v1757_v26 = vpop.permute.xlu0 %1756 }
 0x337   : > { %1823 = vst.msk [vmem:[#allocation3 + $0xf0] sm:$0xff] %vm1792_vm9, %v1757_v26 }
 0x338   : > { %2517 = vmatmul.msk.bf16.gmra.mxu1 %vm2086_vm11, %v2056_v23  ;;  %v2285_v13 = vadd.f32 %v3971_v49, %v2249_v48  ;;  %1816 = vst.msk [vmem:[#allocation3 + $0xb8] sm:$0xff] %vm1792_vm9, %v1743_v34 }
 0x33a   : > { %v2317_v32 = vmax.f32 %v2285_v13, 0.0 }
 0x33b   : > { %v2208_v35 = vpop.f32.mrf.mxu3  ;;  %v1952_v30 = vpop.permute.xlu2 %1951 }
 0x33c   : > { %2349 = vst [vmem:[%s3979_s13 + $0x88] sm:$0xff] %v2317_v32  ;;  %v2256_v47 = vmul.f32 %v3965_v9, %v2208_v35 }
 0x33d   : > { %v1741_v28 = vpop.permute.xlu1 %1740 }
 0x33e   : > { %v2292_v43 = vadd.f32 %v3971_v49, %v2256_v47  ;;  %1815 = vst.msk [vmem:[#allocation3 + $0xb0] sm:$0xff] %vm1792_vm9, %v1741_v28  ;;  %v1936_v40 = vpop.permute.xlu0 %1935 }
 0x33f   : > { %2009 = vst.msk [vmem:[#allocation3 + $0xb8] sm:$0xff] %vm1985_vm10, %v1936_v40 }
 0x340   : > { %v2324_v12 = vmax.f32 %v2292_v43, 0.0  ;;  %2008 = vst.msk [vmem:[#allocation3 + $0xb0] sm:$0xff] %vm1985_vm10, %v1934_v38 }
 0x342   : > { %2356 = vst [vmem:[%s3979_s13 + $0xc0] sm:$0xff] %v2324_v12 }
 0x343   : > { %v2210_v29 = vpop.f32.mrf.mxu3  ;;  %v1709_v25 = vpop.permute.xlu2 %1708 }
 0x344   : > { %v2257_v42 = vmul.f32 %v3965_v9, %v2210_v29  ;;  %1799 = vst.msk [vmem:[#allocation3 + $0x30] sm:$0xff] %vm1792_vm9, %v1709_v25 }
 0x345   : > { %v2148_v61 = vpop.f32.mrf.mxu0  ;;  %v1759_v52 = vpop.permute.xlu1 %1758 }
 0x346   : > { %v2293_v50 = vadd.f32 %v3971_v49, %v2257_v42  ;;  %v2232_v36 = vmul.f32 %v3965_v9, %v2148_v61  ;;  %1824 = vst.msk [vmem:[#allocation3 + $0xf8] sm:$0xff] %vm1792_vm9, %v1759_v52  ;;  %v1532_v55 = vpop.permute.xlu0 %1531  ;;  %v2041_v2 = vld [vmem:[#allocation3 + $0xb8] sm:$0xff] }
 0x347   : > { %1614 = vst.msk [vmem:[#allocation3 + $0x70] sm:$0xff] %vm1599_vm7, %v1532_v55  ;;  %v2040_v31 = vld [vmem:[#allocation3 + $0xb0] sm:$0xff] }
 0x348   : > { %v2325_v58 = vmax.f32 %v2293_v50, 0.0  ;;  %v2268_v57 = vadd.f32 %v3971_v49, %v2232_v36  ;;  %2017 = vst.msk [vmem:[#allocation3 + $0xf8] sm:$0xff] %vm1985_vm10, %v1952_v30  ;;  %v2061_v18 = vpack.c.bf16 %v2041_v2, %v2040_v31 }
 0x34a   : > { %2357 = vst [vmem:[%s3979_s13 + $0xc8] sm:$0xff] %v2325_v58  ;;  %v2300_v44 = vmax.f32 %v2268_v57, 0.0  ;;  %2522 = vmatmul.msk.bf16.gmra.mxu2 %vm2086_vm11, %v2061_v18 }
 0x34b   : > { %v1727_v7 = vpop.permute.xlu2 %1726 }
 0x34c   : > { %2332 = vst [vmem:[%s3979_s13] sm:$0xff] %v2300_v44 }
 0x34d   : > { %v2150_v39 = vpop.f32.mrf.mxu0  ;;  %v2168_v21 = vpop.f32.mrf.mxu1 }
 0x34e   : > { %v2233_v45 = vmul.f32 %v3965_v9, %v2150_v39  ;;  %v2240_v63 = vmul.f32 %v3965_v9, %v2168_v21  ;;  %v1950_v51 = vpop.permute.xlu1 %1949  ;;  %v1711_v46 = vpop.permute.xlu0 %1710 }
 0x34f   : > { %2016 = vst.msk [vmem:[#allocation3 + $0xf0] sm:$0xff] %vm1985_vm10, %v1950_v51  ;;  %v2049_v0 = vld [vmem:[#allocation3 + $0xf8] sm:$0xff] }
 0x350   : > { %v2269_v37 = vadd.f32 %v3971_v49, %v2233_v45  ;;  %v2276_v3 = vadd.f32 %v3971_v49, %v2240_v63  ;;  %1800 = vst.msk [vmem:[#allocation3 + $0x38] sm:$0xff] %vm1792_vm9, %v1711_v46 }
 0x352   : > { %v2301_v59 = vmax.f32 %v2269_v37, 0.0  ;;  %v2308_v54 = vmax.f32 %v2276_v3, 0.0 }
 0x353   : > { %v1918_v27 = vpop.permute.xlu2 %1917 }
 0x354   : > { %2333 = vst [vmem:[%s3979_s13 + $0x8] sm:$0xff] %v2301_v59 }
 0x355   : > { %2340 = vst [vmem:[%s3979_s13 + $0x40] sm:$0xff] %v2308_v54  ;;  %v2170_v22 = vpop.f32.mrf.mxu1 }
 0x356   : > { %v2241_v60 = vmul.f32 %v3965_v9, %v2170_v22  ;;  %v1534_v10 = vpop.permute.xlu1 %1533  ;;  %v2048_v1 = vld [vmem:[#allocation3 + $0xf0] sm:$0xff]  ;;  %v1902_v4 = vpop.permute.xlu0 %1901 }
 0x357   : > { %1615 = vst.msk [vmem:[#allocation3 + $0x78] sm:$0xff] %vm1599_vm7, %v1534_v10  ;;  %v2065_v15 = vpack.c.bf16 %v2049_v0, %v2048_v1 }
 0x358   : > { %v2277_v8 = vadd.f32 %v3971_v49, %v2241_v60  ;;  %1992 = vst.msk [vmem:[#allocation3 + $0x30] sm:$0xff] %vm1985_vm10, %v1902_v4 }
 0x359   : > { %2526 = vmatmul.msk.bf16.gmra.mxu3 %vm2086_vm11, %v2065_v15  ;;  %1808 = vst.msk [vmem:[#allocation3 + $0x78] sm:$0xff] %vm1792_vm9, %v1727_v7 }
 0x35a   : > { %v2309_v5 = vmax.f32 %v2277_v8, 0.0 }
 0x35c   : > { %2341 = vst [vmem:[%s3979_s13 + $0x48] sm:$0xff] %v2309_v5 }
 0x35e   : > { %v1725_v6 = vpop.permute.xlu1 %1724  ;;  %v1920_v11 = vpop.permute.xlu0 %1919 }
 0x35f   : > { %1807 = vst.msk [vmem:[#allocation3 + $0x70] sm:$0xff] %vm1792_vm9, %v1725_v6  ;;  %v2024_v53 = vld [vmem:[#allocation3 + $0x30] sm:$0xff] }
 0x360   : > { %2001 = vst.msk [vmem:[#allocation3 + $0x78] sm:$0xff] %vm1985_vm10, %v1920_v11 }
 0x361   : > { %2000 = vst.msk [vmem:[#allocation3 + $0x70] sm:$0xff] %vm1985_vm10, %v1918_v27 }
 0x366   : > { %v1904_v20 = vpop.permute.xlu1 %1903 }
 0x367   : > { %1993 = vst.msk [vmem:[#allocation3 + $0x38] sm:$0xff] %vm1985_vm10, %v1904_v20  ;;  %v2033_v34 = vld [vmem:[#allocation3 + $0x78] sm:$0xff] }
 0x368   : > { %v2032_v33 = vld [vmem:[#allocation3 + $0x70] sm:$0xff] }
 0x369   : > { %v2057_v41 = vpack.c.bf16 %v2033_v34, %v2032_v33 }
 0x36b   : > { %v2193_v14 = vpop.f32.mrf.mxu2  ;;  %2518 = vmatmul.msk.bf16.gmra.mxu1 %vm2086_vm11, %v2057_v41 }
 0x36c   : > { %v2250_v17 = vmul.f32 %v3965_v9, %v2193_v14 }
 0x36e   : > { %v2286_v16 = vadd.f32 %v3971_v49, %v2250_v17  ;;  %v2025_v56 = vld [vmem:[#allocation3 + $0x38] sm:$0xff] }
 0x36f   : > { %v2053_v38 = vpack.c.bf16 %v2025_v56, %v2024_v53 }
 0x370   : > { %v2318_v19 = vmax.f32 %v2286_v16, 0.0 }
 0x371   : > { %2514 = vmatmul.msk.bf16.gmra.mxu0 %vm2086_vm11, %v2053_v38 }
 0x372   : > { %2350 = vst [vmem:[%s3979_s13 + $0x90] sm:$0xff] %v2318_v19 }
 0x373   : > { %v2195_v24 = vpop.f32.mrf.mxu2  ;;  %v2213_v62 = vpop.f32.mrf.mxu3 }
 0x374   : > { %v2251_v23 = vmul.f32 %v3965_v9, %v2195_v24  ;;  %v2258_v48 = vmul.f32 %v3965_v9, %v2213_v62 }
 0x376   : > { %v2287_v26 = vadd.f32 %v3971_v49, %v2251_v23  ;;  %v2294_v13 = vadd.f32 %v3971_v49, %v2258_v48 }
 0x377   : > { %v2173_v32 = vpop.f32.mrf.mxu1 }
 0x378   : > { %v2319_v35 = vmax.f32 %v2287_v26, 0.0  ;;  %v2326_v30 = vmax.f32 %v2294_v13, 0.0  ;;  %v2242_v47 = vmul.f32 %v3965_v9, %v2173_v32 }
 0x37a   : > { %2351 = vst [vmem:[%s3979_s13 + $0x98] sm:$0xff] %v2319_v35  ;;  %v2278_v28 = vadd.f32 %v3971_v49, %v2242_v47 }
 0x37b   : > { %2358 = vst [vmem:[%s3979_s13 + $0xd0] sm:$0xff] %v2326_v30  ;;  %v2215_v43 = vpop.f32.mrf.mxu3 }
 0x37c   : > { %v2259_v40 = vmul.f32 %v3965_v9, %v2215_v43  ;;  %v2310_v12 = vmax.f32 %v2278_v28, 0.0 }
 0x37d   : > { %v2153_v29 = vpop.f32.mrf.mxu0 }
 0x37e   : > { %v2295_v25 = vadd.f32 %v3971_v49, %v2259_v40  ;;  %v2234_v42 = vmul.f32 %v3965_v9, %v2153_v29  ;;  %2342 = vst [vmem:[%s3979_s13 + $0x50] sm:$0xff] %v2310_v12 }
 0x37f   : > { %v2175_v61 = vpop.f32.mrf.mxu1 }
 0x380   : > { %v2327_v52 = vmax.f32 %v2295_v25, 0.0  ;;  %v2270_v50 = vadd.f32 %v3971_v49, %v2234_v42  ;;  %v2243_v36 = vmul.f32 %v3965_v9, %v2175_v61 }
 0x382   : > { %2359 = vst [vmem:[%s3979_s13 + $0xd8] sm:$0xff] %v2327_v52  ;;  %v2302_v55 = vmax.f32 %v2270_v50, 0.0  ;;  %v2279_v2 = vadd.f32 %v3971_v49, %v2243_v36 }
 0x384   : > { %2334 = vst [vmem:[%s3979_s13 + $0x10] sm:$0xff] %v2302_v55  ;;  %v2311_v31 = vmax.f32 %v2279_v2, 0.0 }
 0x385   : > { %v2155_v58 = vpop.f32.mrf.mxu0 }
 0x386   : > { %v2235_v57 = vmul.f32 %v3965_v9, %v2155_v58  ;;  %2343 = vst [vmem:[%s3979_s13 + $0x58] sm:$0xff] %v2311_v31 }
 0x388   : > { %v2271_v18 = vadd.f32 %v3971_v49, %v2235_v57 }
 0x38a   : > { %v2303_v44 = vmax.f32 %v2271_v18, 0.0 }
 0x38c   : > { %2335 = vst [vmem:[%s3979_s13 + $0x18] sm:$0xff] %v2303_v44 }
 0x39d   : > { %v2218_v39 = vpop.f32.mrf.mxu3 }
 0x39e   : > { %v2260_v21 = vmul.f32 %v3965_v9, %v2218_v39 }
 0x3a0   : > { %v2296_v45 = vadd.f32 %v3971_v49, %v2260_v21 }
 0x3a2   : > { %v2328_v63 = vmax.f32 %v2296_v45, 0.0 }
 0x3a3   : > { %v2198_v51 = vpop.f32.mrf.mxu2 }
 0x3a4   : > { %v2252_v46 = vmul.f32 %v3965_v9, %v2198_v51  ;;  %2360 = vst [vmem:[%s3979_s13 + $0xe0] sm:$0xff] %v2328_v63 }
 0x3a5   : > { %v2220_v37 = vpop.f32.mrf.mxu3 }
 0x3a6   : > { %v2288_v3 = vadd.f32 %v3971_v49, %v2252_v46  ;;  %v2261_v59 = vmul.f32 %v3965_v9, %v2220_v37 }
 0x3a7   : > { %v2158_v54 = vpop.f32.mrf.mxu0 }
 0x3a8   : > { %v2320_v7 = vmax.f32 %v2288_v3, 0.0  ;;  %v2297_v0 = vadd.f32 %v3971_v49, %v2261_v59  ;;  %v2236_v22 = vmul.f32 %v3965_v9, %v2158_v54 }
 0x3aa   : > { %2352 = vst [vmem:[%s3979_s13 + $0xa0] sm:$0xff] %v2320_v7  ;;  %v2329_v60 = vmax.f32 %v2297_v0, 0.0  ;;  %v2272_v10 = vadd.f32 %v3971_v49, %v2236_v22 }
 0x3ab   : > { %v2200_v1 = vpop.f32.mrf.mxu2 }
 0x3ac   : > { %v2253_v4 = vmul.f32 %v3965_v9, %v2200_v1  ;;  %2361 = vst [vmem:[%s3979_s13 + $0xe8] sm:$0xff] %v2329_v60  ;;  %v2304_v15 = vmax.f32 %v2272_v10, 0.0 }
 0x3ae   : > { %v2289_v8 = vadd.f32 %v3971_v49, %v2253_v4  ;;  %2336 = vst [vmem:[%s3979_s13 + $0x20] sm:$0xff] %v2304_v15 }
 0x3af   : > { %v2160_v5 = vpop.f32.mrf.mxu0 }
 0x3b0   : > { %v2321_v27 = vmax.f32 %v2289_v8, 0.0  ;;  %v2237_v6 = vmul.f32 %v3965_v9, %v2160_v5 }
 0x3b2   : > { %2353 = vst [vmem:[%s3979_s13 + $0xa8] sm:$0xff] %v2321_v27  ;;  %v2273_v11 = vadd.f32 %v3971_v49, %v2237_v6 }
 0x3b4   : > { %v2305_v20 = vmax.f32 %v2273_v11, 0.0 }
 0x3b5   : > { %v2178_v34 = vpop.f32.mrf.mxu1 }
 0x3b6   : > { %2337 = vst [vmem:[%s3979_s13 + $0x28] sm:$0xff] %v2305_v20  ;;  %v2244_v33 = vmul.f32 %v3965_v9, %v2178_v34 }
 0x3b8   : > { %v2280_v41 = vadd.f32 %v3971_v49, %v2244_v33 }
 0x3ba   : > { %v2312_v14 = vmax.f32 %v2280_v41, 0.0 }
 0x3bc   : > { %2344 = vst [vmem:[%s3979_s13 + $0x60] sm:$0xff] %v2312_v14 }
 0x3bd   : > { %v2180_v17 = vpop.f32.mrf.mxu1 }
 0x3be   : > { %v2245_v16 = vmul.f32 %v3965_v9, %v2180_v17 }
 0x3c0   : > { %v2281_v53 = vadd.f32 %v3971_v49, %v2245_v16 }
 0x3c2   : > { %v2313_v56 = vmax.f32 %v2281_v53, 0.0 }
 0x3c4   : > { %2345 = vst [vmem:[%s3979_s13 + $0x68] sm:$0xff] %v2313_v56 }
 0x3cd   : > { %v2203_v38 = vpop.f32.mrf.mxu2 }
 0x3ce   : > { %v2254_v19 = vmul.f32 %v3965_v9, %v2203_v38 }
 0x3d0   : > { %v2290_v24 = vadd.f32 %v3971_v49, %v2254_v19 }
 0x3d2   : > { %v2322_v62 = vmax.f32 %v2290_v24, 0.0 }
 0x3d4   : > { %2354 = vst [vmem:[%s3979_s13 + $0xb0] sm:$0xff] %v2322_v62 }
 0x3d5   : > { %v2205_v23 = vpop.f32.mrf.mxu2 }
 0x3d6   : > { %v2255_v48 = vmul.f32 %v3965_v9, %v2205_v23 }
 0x3d8   : > { %v2291_v26 = vadd.f32 %v3971_v49, %v2255_v48 }
 0x3da   : > { %v2323_v13 = vmax.f32 %v2291_v26, 0.0 }
 0x3dc   : > { %2355 = vst [vmem:[%s3979_s13 + $0xb8] sm:$0xff] %v2323_v13  ;;  %v2223_v32 = vpop.f32.mrf.mxu3 }
 0x3dd   : > { %v2262_v35 = vmul.f32 %v3965_v9, %v2223_v32 }
 0x3df   : > { %v2298_v30 = vadd.f32 %v3971_v49, %v2262_v35 }
 0x3e1   : > { %v2330_v47 = vmax.f32 %v2298_v30, 0.0 }
 0x3e3   : > { %2362 = vst [vmem:[%s3979_s13 + $0xf0] sm:$0xff] %v2330_v47 }
 0x3e4   : > { %v2225_v28 = vpop.f32.mrf.mxu3 }
 0x3e5   : > { %v2263_v43 = vmul.f32 %v3965_v9, %v2225_v28 }
 0x3e7   : > { %v2299_v40 = vadd.f32 %v3971_v49, %v2263_v43 }
 0x3e8   : > { %v2183_v12 = vpop.f32.mrf.mxu1 }
 0x3e9   : > { %v2331_v29 = vmax.f32 %v2299_v40, 0.0  ;;  %v2246_v25 = vmul.f32 %v3965_v9, %v2183_v12 }
 0x3eb   : > { %2363 = vst [vmem:[%s3979_s13 + $0xf8] sm:$0xff] %v2331_v29  ;;  %v2282_v42 = vadd.f32 %v3971_v49, %v2246_v25 }
 0x3ed   : > { %v2314_v61 = vmax.f32 %v2282_v42, 0.0 }
 0x3ee   : > { %v2163_v52 = vpop.f32.mrf.mxu0 }
 0x3ef   : > { %v2238_v50 = vmul.f32 %v3965_v9, %v2163_v52  ;;  %2346 = vst [vmem:[%s3979_s13 + $0x70] sm:$0xff] %v2314_v61 }
 0x3f0   : > { %v2185_v36 = vpop.f32.mrf.mxu1 }
 0x3f1   : > { %v2274_v55 = vadd.f32 %v3971_v49, %v2238_v50  ;;  %v2247_v2 = vmul.f32 %v3965_v9, %v2185_v36 }
 0x3f3   : > { %v2306_v31 = vmax.f32 %v2274_v55, 0.0  ;;  %v2283_v58 = vadd.f32 %v3971_v49, %v2247_v2 }
 0x3f5   : > { %2338 = vst [vmem:[%s3979_s13 + $0x30] sm:$0xff] %v2306_v31  ;;  %v2315_v57 = vmax.f32 %v2283_v58, 0.0 }
 0x3f6   : > { %v2165_v18 = vpop.f32.mrf.mxu0 }
 0x3f7   : > { %v2239_v44 = vmul.f32 %v3965_v9, %v2165_v18  ;;  %2347 = vst [vmem:[%s3979_s13 + $0x78] sm:$0xff] %v2315_v57 }
 0x3f9   : > { %v2275_v39 = vadd.f32 %v3971_v49, %v2239_v44 }
 0x3fb   : > { %v2307_v21 = vmax.f32 %v2275_v39, 0.0 }
 0x3fd   : > { %2339 = vst [vmem:[%s3979_s13 + $0x38] sm:$0xff] %v2307_v21 }
 0x3fe   : > { %2718 = shalt.err (!%p2715_p5)
}
 0x3ff   : > { %s2780_s8 = smov 128  }
 0x400   : > { %2624 = dma.vmem_to_hbm [thread:$0]  (%p2846_p4), %s2379_s26, 4096, %s2381_s29, %s2365_s18, %s2780_s8, %s2780_s8, %s2773_s9  }
 0x401 PF: > { %p2630_p6 = scmp.ge.s32.totalorder %s2769_s20, 2  ;;  %s2395_s13 = sand.u32 1, %s2749_s15  }
 0x402   : > { %s2396_s14 = scalar_lea.sflag [#allocation5], %s2395_s13 }
 0x403   : > { %p2627_p7 = pnand %p2630_p6, %p2853_p8 }
 0x405   : > { %p2628_p9 = pneg %p2627_p7 }
 0x407   : > { %2744 = dma.done.wait (%p2628_p9), %s2396_s14, 4096  }
 0x408   : > { %2746 = vsyncadd (%p2628_p9), %s2396_s14, 4294963200  ;;  %s17_s20 = sadd.s32 1, %s2769_s20   ;;  %s4233_s15 = smov %s2753_s16 }
 0x409   : > { %p14_p10 = scmp.ge.s32.totalorder %s17_s20, 4   ;;  %s4234_s16 = smov %s2757_s17 }
 0x40a   : > { %s4235_s17 = smov %s2859_s28  ;;  %s4236_s18 = smov %s2765_s19 }
 0x40b   : > { %s4237_s19 = smov %s4239_s23  ;;  %16 = sbr.rel (!%p14_p10) target bundleno = 4 (0x4), region = 82 }
 0x410   :  { %2402 = vsyncpa [#allocation5], 1 }
 0x411   :  { %2404 = vsyncpa [#allocation5 + $0x1], 1 }

</bundles_post_ra>
